<compile_context>
chip_gen: v5e
topology: v5e:2x2
jax: 0.10.0
libtpu: 0.0.40
codegen_flags: <defaults>
</compile_context>

<pallas_src>
import jax
import jax.numpy as jnp
from jax import lax
from jax.experimental import pallas as pl
from jax.experimental.pallas import tpu as pltpu

_LANES = 128


def _round_up(n, m):
    return ((n + m - 1) // m) * m


def _fcnn_kernel(x_ref, w1_ref, b1_ref, w2_ref, b2_ref, out_ref, *hid_ref):
    """One batch tile.

    x_ref:   (TILE_B, In)  resident dtype (f32 or bf16); cast to compute dtype in-kernel
    w1_ref:  (In, Hp)      compute dtype (bf16), hidden lane-padded to 128
    b1_ref:  (1, Hp)       f32
    w2_ref:  (Os, Hp)      compute dtype (bf16), output sublane-padded to 16
    b2_ref:  (Os, 1)       f32
    out_ref: (Os, TILE_B)  f32  -- TRANSPOSED output (features on sublanes, batch on lanes)
    hid_ref: optional (Hs, TILE_B) bf16 -- transposed hidden, only present for forward_p
    """
    cdtype = w1_ref.dtype

    # Layer 1: (TILE_B, In) @ (In, Hp) -> (TILE_B, Hp). bf16 MXU inputs, f32 accumulate.
    # The x cast happens here on the VPU (huge slack) instead of as a separate XLA pass.
    x = x_ref[...].astype(cdtype)
    h = jnp.dot(x, w1_ref[...], preferred_element_type=jnp.float32)
    h = jnp.tanh(h + b1_ref[...])  # f32 bias + tanh epilogue (v5e-safe)

    if hid_ref:  # forward_p only: transposed bf16 hidden writeback (XLU transpose is idle-slot work)
        ht = h.T  # (Hp, TILE_B) f32
        hid_ref[0][...] = ht[: hid_ref[0].shape[0], :].astype(hid_ref[0].dtype)

    # Layer 2, transposed output: w2 (Os, Hp) contracted with h (TILE_B, Hp) over Hp
    # -> (Os, TILE_B). Same `a @ b.T` pattern as flash attention; no materialized transpose.
    zt = lax.dot_general(
        w2_ref[...],
        h.astype(cdtype),
        dimension_numbers=(((1,), (1,)), ((), ())),
        preferred_element_type=jnp.float32,
    )
    out_ref[...] = jnp.tanh(zt + b2_ref[...]).astype(out_ref.dtype)


def prepare_params(w1, b1, w2, b2, compute_dtype=jnp.bfloat16):
    """One-time parameter prep (the analogue of model init).

    - W1 transposed to (In, Hp) so layer 1 is a plain streaming GEMM.
    - W2 kept in its natural (O, H) layout, sublane-padded to (Os=16, Hp) so layer 2
      produces the transposed (Os, TILE_B) output directly.
    - Hidden contraction dim padded to 128 lanes; output padded only to 16 sublanes
      (NOT 256 / 128 lanes) -- keeps HBM bytes minimal since compute is not the bottleneck.
    - Weights cast to the MXU compute dtype (bf16); biases stay f32 for the f32 epilogue.
    """
    H, In = w1.shape
    O, H2 = w2.shape
    assert H2 == H
    Hp = _round_up(H, _LANES)  # lane-padded hidden (layer-1 output lanes / layer-2 contraction)
    Hs = _round_up(H, 16)      # sublane rows of the transposed bf16 hidden writeback
    Os = _round_up(O, 16)      # sublane rows of the transposed output writeback

    w1t = jnp.zeros((In, Hp), compute_dtype).at[:, :H].set(w1.T.astype(compute_dtype))
    b1p = jnp.zeros((1, Hp), jnp.float32).at[:, :H].set(b1.reshape(1, H).astype(jnp.float32))
    w2s = jnp.zeros((Os, Hp), compute_dtype).at[:O, :H].set(w2.astype(compute_dtype))
    b2c = jnp.zeros((Os, 1), jnp.float32).at[:O, 0].set(b2.astype(jnp.float32))
    return {"w1t": w1t, "b1": b1p, "w2s": w2s, "b2": b2c,
            "H": H, "O": O, "Hp": Hp, "Hs": Hs, "Os": Os}


def _fcnn_pallas(x, params, tile_b, return_hidden, core_parallel=False):
    w1t, b1, w2s, b2 = params["w1t"], params["b1"], params["w2s"], params["b2"]
    In, Hp = w1t.shape
    Os = w2s.shape[0]
    Hs = params["Hs"]
    B = x.shape[0]
    assert x.shape[1] == In

    # Batch tile: multiple of 128 (MXU rows / bf16 16-sublane pack), capped so there are
    # at least 2 grid steps when the batch allows it (lets v7x shard tiles across both TCs).
    tb = max(_LANES, _round_up(min(tile_b, B), _LANES))
    if B >= 2 * _LANES:
        tb = min(tb, _round_up(pl.cdiv(B, 2), _LANES))
    Bp = _round_up(B, tb)

    x_in = x  # resident dtype (f32 or bf16): no wrapper astype -- the cast is in-kernel
    if Bp != B:
        # Fallback only when B is not a multiple of the tile (costs one extra pass over x);
        # callers should prefer batch sizes divisible by the tile.
        x_in = jnp.pad(x_in, ((0, Bp - B), (0, 0)))

    grid = (Bp // tb,)

    out_shapes = [jax.ShapeDtypeStruct((Os, Bp), jnp.float32)]
    out_specs = [pl.BlockSpec((Os, tb), lambda i: (0, i))]
    if return_hidden:
        out_shapes.append(jax.ShapeDtypeStruct((Hs, Bp), jnp.bfloat16))
        out_specs.append(pl.BlockSpec((Hs, tb), lambda i: (0, i)))

    # Default "parallel" is safe everywhere; pass core_parallel=True on v7x to shard the
    # batch-tile axis across the two TensorCores.
    dim_sem = (pltpu.CORE_PARALLEL,) if core_parallel else (pltpu.PARALLEL,)

    return pl.pallas_call(
        _fcnn_kernel,
        out_shape=tuple(out_shapes),
        grid_spec=pltpu.PrefetchScalarGridSpec(
            num_scalar_prefetch=0,
            grid=grid,
            in_specs=[
                pl.BlockSpec((tb, In), lambda i: (i, 0)),  # x tile: double-buffered stream
                pl.BlockSpec((In, Hp), lambda i: (0, 0)),  # weights/biases: VMEM-resident
                pl.BlockSpec((1, Hp), lambda i: (0, 0)),
                pl.BlockSpec((Os, Hp), lambda i: (0, 0)),
                pl.BlockSpec((Os, 1), lambda i: (0, 0)),
            ],
            out_specs=tuple(out_specs),
        ),
        compiler_params=pltpu.CompilerParams(
            dimension_semantics=dim_sem,
            vmem_limit_bytes=48 * 1024 * 1024,  # explicit; fits v7x's 64 MiB VMEM with headroom
        ),
    )(x_in, w1t, b1, w2s, b2)


def fcnn_forward(x, params, tile_b=1024, core_parallel=False):
    """forward(x): output only -- hidden never leaves VMEM. Returns (B, O) f32."""
    (out_t,) = _fcnn_pallas(x, params, tile_b, return_hidden=False, core_parallel=core_parallel)
    # Transposed output buffer is only (Os=16, Bp): this slice/transpose is a tiny pass.
    return out_t[: params["O"], : x.shape[0]].T


def fcnn_forward_p(x, params, tile_b=1024, core_parallel=False):
    """forward_p(x): (output, hidden) -> ((B, O) f32, (B, H) f32)."""
    out_t, hid_t = _fcnn_pallas(x, params, tile_b, return_hidden=True, core_parallel=core_parallel)
    B = x.shape[0]
    out = out_t[: params["O"], :B].T
    hid = hid_t[: params["H"], :B].T.astype(jnp.float32)
    return out, hid


# TODO(synk): training_session / stragglers (SGD, CrossEntropyLoss, dataset & file I/O) are
# host-side training logic with no Pallas equivalent; only forward / forward_p are kernelized.

if __name__ == "__main__":
    # Deterministic example consistent with the module:
    # input_size = 28*28 = 784, hidden_size = 32, output_size = 2.
    B, In, H, O = 1024, 28 * 28, 32, 2
    TILE_B = 256  # 4 grid steps -> exercises the batch pipeline; B % tile == 0 -> no padding

    key = jax.random.PRNGKey(0)
    kx, kw1, kb1, kw2, kb2 = jax.random.split(key, 5)

    x = jax.random.normal(kx, (B, In), dtype=jnp.float32)
    # PyTorch Linear default init: U(-1/sqrt(fan_in), 1/sqrt(fan_in))
    bound1 = 1.0 / jnp.sqrt(jnp.float32(In))
    w1 = jax.random.uniform(kw1, (H, In), jnp.float32, -bound1, bound1)
    b1 = jax.random.uniform(kb1, (H,), jnp.float32, -bound1, bound1)
    bound2 = 1.0 / jnp.sqrt(jnp.float32(H))
    w2 = jax.random.uniform(kw2, (O, H), jnp.float32, -bound2, bound2)
    b2 = jax.random.uniform(kb2, (O,), jnp.float32, -bound2, bound2)

    params = prepare_params(w1, b1, w2, b2, compute_dtype=jnp.bfloat16)

    out, hidden = fcnn_forward_p(x, params, tile_b=TILE_B)
    out = jax.block_until_ready(out)
    hidden = jax.block_until_ready(hidden)
    out_only = jax.block_until_ready(fcnn_forward(x, params, tile_b=TILE_B))

    assert out.shape == (B, O) and hidden.shape == (B, H)
    assert out_only.shape == (B, O)

    # Reference emulating the kernel numerics (bf16 MXU inputs, f32 accumulate).
    hp = lax.Precision.HIGHEST
    xr = x.astype(jnp.bfloat16).astype(jnp.float32)
    w1r = w1.astype(jnp.bfloat16).astype(jnp.float32)
    w2r = w2.astype(jnp.bfloat16).astype(jnp.float32)
    h_ref = jnp.tanh(jnp.dot(xr, w1r.T, precision=hp) + b1)
    # hidden is stored in bf16 (quantization <= ~4e-3 for tanh outputs in [-1, 1]).
    assert jnp.allclose(hidden, h_ref, atol=1e-2), "hidden mismatch vs bf16-emulated reference"
    # Layer-2 check driven by the kernel's own (bf16-stored) hidden, matching the in-kernel cast.
    o_ref = jnp.tanh(jnp.dot(hidden.astype(jnp.bfloat16).astype(jnp.float32), w2r.T,
                             precision=hp) + b2)
    assert jnp.allclose(out, o_ref, atol=2e-3), "output mismatch vs bf16-emulated reference"
    assert jnp.allclose(out_only, out, atol=1e-5), "forward vs forward_p mismatch"

    # Loose sanity check against the full-f32 PyTorch-equivalent math.
    h32 = jnp.tanh(x @ w1.T + b1)
    o32 = jnp.tanh(h32 @ w2.T + b2)
    assert jnp.allclose(out, o32, atol=5e-2), "output too far from f32 reference"
    assert jnp.allclose(hidden, h32, atol=5e-2), "hidden too far from f32 reference"

    print("KERNEL_OK")
</pallas_src>

<mosaic_0001>
module attributes {stable_mosaic.version = 11 : i64} {
  func.func @_fcnn_kernel(%arg0: i32, %arg1: memref<256x784xf32, #tpu.memory_space<vmem>>, %arg2: memref<784x128xbf16, #tpu.memory_space<vmem>>, %arg3: memref<1x128xf32, #tpu.memory_space<vmem>>, %arg4: memref<16x128xbf16, #tpu.memory_space<vmem>>, %arg5: memref<16x1xf32, #tpu.memory_space<vmem>>, %arg6: memref<16x256xf32, #tpu.memory_space<vmem>>, %arg7: memref<32x256xbf16, #tpu.memory_space<vmem>>) attributes {dimension_semantics = [#tpu.dimension_semantics<parallel>], iteration_bounds = array<i64: 4>, scalar_prefetch = 0 : i64, scratch_operands = 0 : i64, tpu.core_type = #tpu.core_type<tc>, window_params = [{transform_indices = @transform_0, window_bounds = array<i64: 256, 784>}, {pipeline_mode = #tpu.pipeline_mode<synchronous>, transform_indices = @transform_1, window_bounds = array<i64: 784, 128>}, {pipeline_mode = #tpu.pipeline_mode<synchronous>, transform_indices = @transform_2, window_bounds = array<i64: 1, 128>}, {pipeline_mode = #tpu.pipeline_mode<synchronous>, transform_indices = @transform_3, window_bounds = array<i64: 16, 128>}, {pipeline_mode = #tpu.pipeline_mode<synchronous>, transform_indices = @transform_4, window_bounds = array<i64: 16, 1>}, {transform_indices = @transform_5, window_bounds = array<i64: 16, 256>}, {transform_indices = @transform_6, window_bounds = array<i64: 32, 256>}]} {
    %c0 = arith.constant 0 : index
    %c0_0 = arith.constant 0 : index
    %0 = vector.load %arg1[%c0, %c0_0] : memref<256x784xf32, #tpu.memory_space<vmem>>, vector<256x784xf32>
    %1 = arith.truncf %0 : vector<256x784xf32> to vector<256x784xbf16>
    %c0_1 = arith.constant 0 : index
    %c0_2 = arith.constant 0 : index
    %2 = vector.load %arg2[%c0_1, %c0_2] : memref<784x128xbf16, #tpu.memory_space<vmem>>, vector<784x128xbf16>
    %cst = arith.constant dense<0.000000e+00> : vector<256x128xf32>
    %3 = tpu.matmul %1, %2, %cst {dimension_numbers = #tpu.dot_dimension_numbers<[1], [0], [0], [1], [0, 0, 1, 1], [], []>} : vector<256x784xbf16>, vector<784x128xbf16>, vector<256x128xf32> -> vector<256x128xf32>
    %c0_3 = arith.constant 0 : index
    %c0_4 = arith.constant 0 : index
    %4 = vector.load %arg3[%c0_3, %c0_4] : memref<1x128xf32, #tpu.memory_space<vmem>>, vector<1x128xf32>
    %5 = vector.broadcast %4 : vector<1x128xf32> to vector<256x128xf32>
    %6 = arith.addf %3, %5 : vector<256x128xf32>
    %7 = math.tanh %6 : vector<256x128xf32>
    %8 = tpu.transpose %7, [1, 0] : vector<256x128xf32> -> vector<128x256xf32>
    %9 = vector.extract_strided_slice %8 {offsets = [0, 0], sizes = [32, 256], strides = [1, 1]} : vector<128x256xf32> to vector<32x256xf32>
    %10 = arith.truncf %9 : vector<32x256xf32> to vector<32x256xbf16>
    %c0_5 = arith.constant 0 : index
    %c0_6 = arith.constant 0 : index
    %11 = vector.load %arg7[%c0_5, %c0_6] : memref<32x256xbf16, #tpu.memory_space<vmem>>, vector<32x256xbf16>
    tpu.vector_store %arg7[%c0_5, %c0_6], %10 {strides = array<i32>} : memref<32x256xbf16, #tpu.memory_space<vmem>>, vector<32x256xbf16>,
    %c0_7 = arith.constant 0 : index
    %c0_8 = arith.constant 0 : index
    %12 = vector.load %arg4[%c0_7, %c0_8] : memref<16x128xbf16, #tpu.memory_space<vmem>>, vector<16x128xbf16>
    %13 = arith.truncf %7 : vector<256x128xf32> to vector<256x128xbf16>
    %cst_9 = arith.constant dense<0.000000e+00> : vector<16x256xf32>
    %14 = tpu.matmul %12, %13, %cst_9 {dimension_numbers = #tpu.dot_dimension_numbers<[1], [1], [0], [0], [0, 0, 1, 0], [], []>} : vector<16x128xbf16>, vector<256x128xbf16>, vector<16x256xf32> -> vector<16x256xf32>
    %c0_10 = arith.constant 0 : index
    %c0_11 = arith.constant 0 : index
    %15 = vector.load %arg5[%c0_10, %c0_11] : memref<16x1xf32, #tpu.memory_space<vmem>>, vector<16x1xf32>
    %16 = vector.broadcast %15 : vector<16x1xf32> to vector<16x256xf32>
    %17 = arith.addf %14, %16 : vector<16x256xf32>
    %18 = math.tanh %17 : vector<16x256xf32>
    %c0_12 = arith.constant 0 : index
    %c0_13 = arith.constant 0 : index
    %19 = vector.load %arg6[%c0_12, %c0_13] : memref<16x256xf32, #tpu.memory_space<vmem>>, vector<16x256xf32>
    tpu.vector_store %arg6[%c0_12, %c0_13], %18 {strides = array<i32>} : memref<16x256xf32, #tpu.memory_space<vmem>>, vector<16x256xf32>,
    return
  }
  func.func @transform_0(%arg0: i32) -> (i32, i32) {
    %c0_i32 = arith.constant 0 : i32
    %c0_i32_0 = arith.constant 0 : i32
    return %arg0, %c0_i32 : i32, i32
  }
  func.func @transform_1(%arg0: i32) -> (i32, i32) {
    %c0_i32 = arith.constant 0 : i32
    %c0_i32_0 = arith.constant 0 : i32
    %c0_i32_1 = arith.constant 0 : i32
    return %c0_i32, %c0_i32_0 : i32, i32
  }
  func.func @transform_2(%arg0: i32) -> (i32, i32) {
    %c0_i32 = arith.constant 0 : i32
    %c0_i32_0 = arith.constant 0 : i32
    %c0_i32_1 = arith.constant 0 : i32
    return %c0_i32, %c0_i32_0 : i32, i32
  }
  func.func @transform_3(%arg0: i32) -> (i32, i32) {
    %c0_i32 = arith.constant 0 : i32
    %c0_i32_0 = arith.constant 0 : i32
    %c0_i32_1 = arith.constant 0 : i32
    return %c0_i32, %c0_i32_0 : i32, i32
  }
  func.func @transform_4(%arg0: i32) -> (i32, i32) {
    %c0_i32 = arith.constant 0 : i32
    %c0_i32_0 = arith.constant 0 : i32
    %c0_i32_1 = arith.constant 0 : i32
    return %c0_i32, %c0_i32_0 : i32, i32
  }
  func.func @transform_5(%arg0: i32) -> (i32, i32) {
    %c0_i32 = arith.constant 0 : i32
    %c0_i32_0 = arith.constant 0 : i32
    return %c0_i32, %arg0 : i32, i32
  }
  func.func @transform_6(%arg0: i32) -> (i32, i32) {
    %c0_i32 = arith.constant 0 : i32
    %c0_i32_0 = arith.constant 0 : i32
    return %c0_i32, %arg0 : i32, i32
  }
}

</mosaic_0001>

<bundles_post_ra>
// kernel: tpu_custom_call.1
= control target key start
LH: loop header
LB: loop body
LE: loop exit
PB: predicated region body
PF: predicated region fallthrough
CT: control target
= control target key end

     0   :  { %12 = vsyncpa [#allocation3], 0  ;;  %s3521_s0 = inlined_call_operand.vmem [shape: f32[1024,784], index: 0, kind: input, shape index: {}]   ;;  %s3522_s1 = inlined_call_operand.vmem [shape: bf16[784,128], index: 1, kind: input, shape index: {}]   ;;  %s3523_s2 = inlined_call_operand.vmem [shape: f32[1,128], index: 2, kind: input, shape index: {}]   ;;  %s3524_s3 = inlined_call_operand.vmem [shape: bf16[16,128], index: 3, kind: input, shape index: {}]   ;;  %s3525_s4 = inlined_call_operand.vmem [shape: f32[16,1], index: 4, kind: input, shape index: {}]   ;;  %s3526_s5 = inlined_call_operand.hbm [shape: f32[16,1024], index: 5, kind: output, shape index: {0}]   ;;  %s3527_s6 = inlined_call_operand.hbm [shape: bf16[32,1024], index: 6, kind: output, shape index: {1}]  }
   0x1   :  { %14 = vsyncpa [#allocation3 + $0x1], 0 }
   0x2   :  { %15 = vsyncpa [#allocation5], 0 }
   0x3   :  { %17 = vsyncpa [#allocation5 + $0x1], 0  ;;  %s2607_s21 = smov 0   ;;  %s2609_s22 = smov 0  }
   0x4   :  { %s2611_s23 = smov 0   ;;  %s2613_s24 = smov 0  }
   0x5 LB: > { %s2628_s25 = sadd.s32 4294967295, %s2563_s24   ;;  %s1982_s26 = sadd.s32 4294967294, %s2563_s24   ;;  %s2563_s24 = sphi %s2613_s24, %s3552_s24   ;;  %s2559_s23 = sphi %s2611_s23, %s3551_s23   ;;  %s2555_s22 = sphi %s2609_s22, %s3550_s22   ;;  %s2551_s21 = sphi %s2607_s21, %s3549_s21  }
   0x6   : > { %s2632_s27 = sadd.s32 1, %s2563_s24   ;;  %s140_s28 = sadd.s32 1, %s2559_s23 }
   0x7   : > { %s137_s29 = ssub.s32 %s2563_s24, %s2632_s27  ;;  %p150_p0 = scmp.ne.s32.totalorder %s2559_s23, %s2555_s22 }
   0x8   : > { %p138_p1 = scmp.eq.s32.totalorder %s137_s29, 0  ;;  %p151_p2 = scmp.eq.s32.totalorder %s2628_s25, 3 }
   0x9   : > { %p156_p3 = scmp.ne.s32.totalorder %s2555_s22, %s2551_s21  ;;  %p157_p4 = scmp.eq.s32.totalorder %s1982_s26, 3 }
   0xa   : > { %s2643_s30 = scalar_select %p138_p1, %s2559_s23, %s140_s28  }
   0xb   : > { %p2645_p5 = por %p151_p2, %p150_p0  ;;  %p2649_p6 = por %p157_p4, %p156_p3 }
   0xc   : > { %p1985_p7 = scmp.ge.s32.totalorder %s2563_s24, 1  ;;  %p223_p8 = scmp.lt.s32.totalorder %s2563_s24, 5 }
   0xe   : > { %p224_p9 = pnand %p1985_p7, %p223_p8 }
  0x10   : > { %227 = sbr.rel (%p224_p9) target bundleno = 887 (0x377), region = 40 }
  0x15   : > { %v2221_v0 = vld [vmem:[%s3522_s1 + $0x38] sm:$0xff]  ;;  %v2220_v3 = vld [vmem:[%s3522_s1 + $0x30] sm:$0xff]  ;;  %v2219_v6 = vld [vmem:[%s3522_s1 + $0x28] sm:$0xff]  ;;  %s1988_s12 = sshll.u32 %s2628_s25, 5  ;;  %vm1001_vm0 = vcmask 130048   ;;  %s3457_s19 = sand.u32 1, %s2555_s22  }
  0x16   : > { %v2661_v1 = vld [vmem:[%s3522_s1 + $0x78] sm:$0xff]  ;;  %1050 = vmatpush.bf16.msra.mxu0 %v2221_v0  ;;  %2266 = vmatpush.bf16.msra.mxu3 %v2221_v0  ;;  %v2676_v4 = vld [vmem:[%s3522_s1 + $0x70] sm:$0xff]  ;;  %v2691_v7 = vld [vmem:[%s3522_s1 + $0x68] sm:$0xff]  ;;  %p260_p10 = scmp.lt.s32.totalorder %s1988_s12, 127  ;;  %s1986_s20 = sshll.u32 %s3457_s19, 5 }
  0x17   : > { %v2666_v2 = vld [vmem:[%s3522_s1 + $0xb8] sm:$0xff]  ;;  %1139 = vmatpush.bf16.msra.mxu1 %v2661_v1  ;;  %v2681_v5 = vld [vmem:[%s3522_s1 + $0xb0] sm:$0xff]  ;;  %v2696_v8 = vld [vmem:[%s3522_s1 + $0xa8] sm:$0xff]  ;;  %s3463_s28 = scalar_lea.vmem [#allocation2], %s1986_s20  ;;  %s2265_s29 = sshll.u32 %s2628_s25, 3 }
  0x18   : > { %1228 = vmatpush.bf16.msra.mxu2 %v2666_v2  ;;  %v2218_v9 = vld [vmem:[%s3522_s1 + $0x20] sm:$0xff]  ;;  %v2217_v12 = vld [vmem:[%s3522_s1 + $0x18] sm:$0xff]  ;;  %s3554_s12 = smov (!%p260_p10, %s1988_s12), 127  ;;  %v2216_v15 = vld [vmem:[%s3522_s1 + $0x10] sm:$0xff]  ;;  %s1883_s11 = scalar_lea.hbm %s3527_s6, %s2265_s29 }
  0x19   : > { %v2707_v10 = vld [vmem:[%s3522_s1 + $0x60] sm:$0xff]  ;;  %v2225_v13 = vld [vmem:[%s3522_s1 + $0x58] sm:$0xff]  ;;  %s2290_s13 = smul.u32 56, %s3554_s12  ;;  %v2224_v16 = vld [vmem:[%s3522_s1 + $0x50] sm:$0xff]  ;;  %s3460_s12 = scalar_lea.vmem [#allocation4], %s1986_s20 }
  0x1a   : > { %1051 = vmatpush.bf16.msra.mxu0 %v2220_v3  ;;  %2267 = vmatpush.bf16.msra.mxu3 %v2220_v3  ;;  %v2712_v11 = vld [vmem:[%s3522_s1 + $0xa0] sm:$0xff]  ;;  %v2725_v14 = vld [vmem:[%s3522_s1 + $0x98] sm:$0xff]  ;;  %v2737_v17 = vld [vmem:[%s3522_s1 + $0x90] sm:$0xff]  ;;  %s1855_s14 = scalar_lea.sflag [#allocation5], %s3457_s19  ;;  %s2489_s20 = scalar_lea.hbm %s3527_s6, 128 }
  0x1b   : > { %1140 = vmatpush.bf16.msra.mxu1 %v2676_v4  ;;  %v2215_v18 = vld [vmem:[%s3522_s1 + $0x8] sm:$0xff]  ;;  %s2745_s26 = scalar_lea.vmem %s3521_s0, %s2290_s13  ;;  %v2214_v21 = vld [vmem:[%s3522_s1] sm:$0xff]  ;;  %s1884_s13 = sshll.u32 %s3460_s12, 4  ;;  %s1885_s13 = int_to_ptr.vmem [resolvable:$true] %s1884_s13 }
  0x1c   : > { %1229 = vmatpush.bf16.msra.mxu2 %v2681_v5  ;;  %v2223_v19 = vld [vmem:[%s3522_s1 + $0x48] sm:$0xff]  ;;  %v2222_v22 = vld [vmem:[%s3522_s1 + $0x40] sm:$0xff]  ;;  %v276_v25 = vld [vmem:[%s2745_s26 + $0x38] sm:$0xff] }
  0x1d   : > { %v2754_v20 = vld [vmem:[%s3522_s1 + $0x88] sm:$0xff]  ;;  %v2765_v23 = vld [vmem:[%s3522_s1 + $0x80] sm:$0xff]  ;;  %v472_v27 = vld [vmem:[%s2745_s26 + $0x658] sm:$0xff] }
  0x1e   : > { %1052 = vmatpush.bf16.msra.mxu0 %v2219_v6  ;;  %2268 = vmatpush.bf16.msra.mxu3 %v2219_v6  ;;  %v269_v24 = vld [vmem:[%s2745_s26] sm:$0xff]  ;;  %v270_v28 = vld [vmem:[%s2745_s26 + $0x8] sm:$0xff]  ;;  %v271_v30 = vld [vmem:[%s2745_s26 + $0x10] sm:$0xff] }
  0x1f   : > { %1141 = vmatpush.bf16.msra.mxu1 %v2691_v7  ;;  %v465_v26 = vld [vmem:[%s2745_s26 + $0x620] sm:$0xff]  ;;  %v278_v31 = vld [vmem:[%s2745_s26 + $0x48] sm:$0xff]  ;;  %v493_v32 = vpack.c.bf16 %v276_v25, %v269_v24  ;;  %v283_v36 = vld [vmem:[%s2745_s26 + $0x70] sm:$0xff] }
  0x20   : > { %1230 = vmatpush.bf16.msra.mxu2 %v2696_v8  ;;  %v277_v29 = vld [vmem:[%s2745_s26 + $0x40] sm:$0xff]  ;;  %v591_v33 = vpack.c.bf16 %v472_v27, %v465_v26  ;;  %v495_v35 = vpack.c.bf16 %v278_v31, %v271_v30  ;;  %v290_v37 = vld [vmem:[%s2745_s26 + $0xa8] sm:$0xff]  ;;  %v479_v38 = vld [vmem:[%s2745_s26 + $0x690] sm:$0xff] }
  0x21   : > { %v494_v34 = vpack.c.bf16 %v277_v29, %v270_v28  ;;  %v486_v39 = vld [vmem:[%s2745_s26 + $0x6c8] sm:$0xff]  ;;  %v284_v40 = vld [vmem:[%s2745_s26 + $0x78] sm:$0xff]  ;;  %v291_v41 = vld [vmem:[%s2745_s26 + $0xb0] sm:$0xff]  ;;  %v500_v44 = vpack.c.bf16 %v290_v37, %v283_v36 }
  0x22   : > { %1053 = vmatpush.bf16.msra.mxu0 %v2218_v9  ;;  %2269 = vmatpush.bf16.msra.mxu3 %v2218_v9  ;;  %v285_v42 = vld [vmem:[%s2745_s26 + $0x80] sm:$0xff]  ;;  %v292_v43 = vld [vmem:[%s2745_s26 + $0xb8] sm:$0xff]  ;;  %v598_v45 = vpack.c.bf16 %v486_v39, %v479_v38  ;;  %v501_v46 = vpack.c.bf16 %v291_v41, %v284_v40  ;;  %v298_v50 = vld [vmem:[%s2745_s26 + $0xe8] sm:$0xff] }
  0x23   : > { %1142 = vmatpush.bf16.msra.mxu1 %v2707_v10  ;;  %v502_v47 = vpack.c.bf16 %v292_v43, %v285_v42  ;;  %v297_v48 = vld [vmem:[%s2745_s26 + $0xe0] sm:$0xff]  ;;  %v304_v49 = vld [vmem:[%s2745_s26 + $0x118] sm:$0xff]  ;;  %v466_v51 = vld [vmem:[%s2745_s26 + $0x628] sm:$0xff] }
  0x24   : > { %1231 = vmatpush.bf16.msra.mxu2 %v2712_v11  ;;  %v473_v52 = vld [vmem:[%s2745_s26 + $0x660] sm:$0xff]  ;;  %v299_v54 = vld [vmem:[%s2745_s26 + $0xf0] sm:$0xff]  ;;  %v306_v55 = vld [vmem:[%s2745_s26 + $0x128] sm:$0xff]  ;;  %v507_v56 = vpack.c.bf16 %v304_v49, %v297_v48 }
  0x25   : > { %v305_v53 = vld [vmem:[%s2745_s26 + $0x120] sm:$0xff]  ;;  %v592_v57 = vpack.c.bf16 %v473_v52, %v466_v51  ;;  %v509_v59 = vpack.c.bf16 %v306_v55, %v299_v54  ;;  %v311_v60 = vld [vmem:[%s2745_s26 + $0x150] sm:$0xff]  ;;  %v318_v61 = vld [vmem:[%s2745_s26 + $0x188] sm:$0xff] }
  0x26   : > { %1054 = vmatpush.bf16.msra.mxu0 %v2217_v12  ;;  %2270 = vmatpush.bf16.msra.mxu3 %v2217_v12  ;;  %v508_v58 = vpack.c.bf16 %v305_v53, %v298_v50  ;;  %v312_v62 = vld [vmem:[%s2745_s26 + $0x158] sm:$0xff]  ;;  %v487_v0 = vld [vmem:[%s2745_s26 + $0x6d0] sm:$0xff]  ;;  %v325_v12 = vld [vmem:[%s2745_s26 + $0x1c0] sm:$0xff] }
  0x27   : > { %1143 = vmatpush.bf16.msra.mxu1 %v2225_v13  ;;  %v480_v63 = vld [vmem:[%s2745_s26 + $0x698] sm:$0xff]  ;;  %v2252_v26 = vld [vmem:[%s3522_s1 + $0x130] sm:$0xff]  ;;  %v2242_v27 = vld [vmem:[%s3522_s1 + $0xe0] sm:$0xff] }
  0x28   : > { %1232 = vmatpush.bf16.msra.mxu2 %v2725_v14  ;;  %v320_v3 = vld [vmem:[%s2745_s26 + $0x198] sm:$0xff]  ;;  %v599_v6 = vpack.c.bf16 %v487_v0, %v480_v63  ;;  %v339_v29 = vld [vmem:[%s2745_s26 + $0x230] sm:$0xff]  ;;  %v346_v30 = vld [vmem:[%s2745_s26 + $0x268] sm:$0xff] }
  0x29   : > { %v2241_v28 = vld [vmem:[%s3522_s1 + $0xd8] sm:$0xff]  ;;  %v2240_v37 = vld [vmem:[%s3522_s1 + $0xd0] sm:$0xff]  ;;  %v528_v38 = vpack.c.bf16 %v346_v30, %v339_v29  ;;  %v2239_v42 = vld [vmem:[%s3522_s1 + $0xc8] sm:$0xff] }
  0x2a   : > { %1055 = vmatpush.bf16.msra.mxu0 %v2216_v15  ;;  %2271 = vmatpush.bf16.msra.mxu3 %v2216_v15  ;;  %v467_v15 = vld [vmem:[%s2745_s26 + $0x630] sm:$0xff]  ;;  %v340_v31 = vld [vmem:[%s2745_s26 + $0x238] sm:$0xff]  ;;  %v361_v50 = vld [vmem:[%s2745_s26 + $0x2e0] sm:$0xff] }
  0x2b   : > { %1144 = vmatpush.bf16.msra.mxu1 %v2224_v16  ;;  %v348_v36 = vld [vmem:[%s2745_s26 + $0x278] sm:$0xff]  ;;  %v2260_v43 = vld [vmem:[%s3522_s1 + $0x170] sm:$0xff]  ;;  %v362_v52 = vld [vmem:[%s2745_s26 + $0x2e8] sm:$0xff] }
  0x2c   : > { %1233 = vmatpush.bf16.msra.mxu2 %v2737_v17  ;;  %v272_v48 = vld [vmem:[%s2745_s26 + $0x18] sm:$0xff]  ;;  %v279_v49 = vld [vmem:[%s2745_s26 + $0x50] sm:$0xff]  ;;  %v369_v63 = vld [vmem:[%s2745_s26 + $0x320] sm:$0xff] }
  0x2d   : > { %v355_v51 = vld [vmem:[%s2745_s26 + $0x2b0] sm:$0xff]  ;;  %v496_v54 = vpack.c.bf16 %v279_v49, %v272_v48  ;;  %v376_v0 = vld [vmem:[%s2745_s26 + $0x358] sm:$0xff] }
  0x2e   : > { %1056 = vmatpush.bf16.msra.mxu0 %v2215_v18  ;;  %2272 = vmatpush.bf16.msra.mxu3 %v2215_v18  ;;  %v327_v18 = vld [vmem:[%s2745_s26 + $0x1d0] sm:$0xff] }
  0x2f   : > { %1145 = vmatpush.bf16.msra.mxu1 %v2223_v19  ;;  %v395_v30 = vld [vmem:[%s2745_s26 + $0x3f0] sm:$0xff] }
  0x30   : > { %1234 = vmatpush.bf16.msra.mxu2 %v2754_v20 }
  0x32   : > { %1057 = vmatpush.bf16.msra.mxu0 %v2214_v21  ;;  %2273 = vmatpush.bf16.msra.mxu3 %v2214_v21  ;;  %v2244_v21 = vld [vmem:[%s3522_s1 + $0xf0] sm:$0xff] }
  0x33   : > { %1146 = vmatpush.bf16.msra.mxu1 %v2222_v22 }
  0x34   : > { %1235 = vmatpush.bf16.msra.mxu2 %v2765_v23 }
  0x35   : > { %1058 = vmatmul.bf16.vlgmr.msra.gmra.mxu0 %v493_v32  ;;  %1128 = vmatmul.bf16.vlgmr.msra.gmra.mxu3 %v591_v33  ;;  %v481_v32 = vld [vmem:[%s2745_s26 + $0x6a0] sm:$0xff]  ;;  %v488_v33 = vld [vmem:[%s2745_s26 + $0x6d8] sm:$0xff] }
  0x36   : > { %2274 = vmatpush.bf16.msrb.mxu3 %v2661_v1  ;;  %1147 = vmatmul.bf16.vlgmr.msra.gmra.mxu1 %v494_v34  ;;  %v319_v1 = vld [vmem:[%s2745_s26 + $0x190] sm:$0xff]  ;;  %v600_v39 = vpack.c.bf16 %v488_v33, %v481_v32  ;;  %v402_v32 = vld [vmem:[%s2745_s26 + $0x428] sm:$0xff]  ;;  %v2250_v33 = vld [vmem:[%s3522_s1 + $0x120] sm:$0xff] }
  0x37   : > { %1236 = vmatmul.bf16.vlgmr.msra.gmra.mxu2 %v495_v35  ;;  %v347_v34 = vld [vmem:[%s2745_s26 + $0x270] sm:$0xff]  ;;  %v341_v35 = vld [vmem:[%s2745_s26 + $0x240] sm:$0xff] }
  0x38   : > { %v529_v40 = vpack.c.bf16 %v347_v34, %v340_v31  ;;  %v530_v41 = vpack.c.bf16 %v348_v36, %v341_v35  ;;  %v2258_v34 = vld [vmem:[%s3522_s1 + $0x160] sm:$0xff]  ;;  %v396_v35 = vld [vmem:[%s2745_s26 + $0x3f8] sm:$0xff]  ;;  %v314_v36 = vld [vmem:[%s2745_s26 + $0x168] sm:$0xff] }
  0x3a   : > { %2275 = vmatpush.bf16.msrb.mxu3 %v2676_v4  ;;  %v514_v4 = vpack.c.bf16 %v318_v61, %v311_v60  ;;  %v286_v60 = vld [vmem:[%s2745_s26 + $0x88] sm:$0xff]  ;;  %v293_v61 = vld [vmem:[%s2745_s26 + $0xc0] sm:$0xff] }
  0x3e   : > { %2276 = vmatpush.bf16.msrb.mxu3 %v2691_v7  ;;  %v515_v7 = vpack.c.bf16 %v319_v1, %v312_v62  ;;  %v375_v62 = vld [vmem:[%s2745_s26 + $0x350] sm:$0xff] }
  0x42   : > { %2277 = vmatpush.bf16.msrb.mxu3 %v2707_v10  ;;  %v2261_v10 = vld [vmem:[%s3522_s1 + $0x178] sm:$0xff] }
  0x43   : > { %1495 = vmatpush.bf16.msrb.mxu1 %v2261_v10  ;;  %v382_v10 = vld [vmem:[%s2745_s26 + $0x388] sm:$0xff] }
  0x45   : > { %1063 = vmatmul.bf16.gmra.mxu0 %v500_v44  ;;  %1133 = vmatmul.bf16.gmra.mxu3 %v598_v45  ;;  %v2238_v44 = vld [vmem:[%s3522_s1 + $0xc0] sm:$0xff] }
  0x46   : > { %2278 = vmatpush.bf16.msrb.mxu3 %v2225_v13  ;;  %1152 = vmatmul.bf16.gmra.mxu1 %v501_v46  ;;  %v332_v13 = vld [vmem:[%s2745_s26 + $0x1f8] sm:$0xff]  ;;  %v353_v45 = vld [vmem:[%s2745_s26 + $0x2a0] sm:$0xff] }
  0x47   : > { %1241 = vmatmul.bf16.gmra.mxu2 %v502_v47  ;;  %1496 = vmatpush.bf16.msrb.mxu1 %v2260_v43  ;;  %v360_v46 = vld [vmem:[%s2745_s26 + $0x2d8] sm:$0xff]  ;;  %v354_v47 = vld [vmem:[%s2745_s26 + $0x2a8] sm:$0xff]  ;;  %v556_v43 = vpack.c.bf16 %v402_v32, %v395_v30  ;;  %v349_v32 = vld [vmem:[%s2745_s26 + $0x280] sm:$0xff] }
  0x48   : > { %v535_v53 = vpack.c.bf16 %v360_v46, %v353_v45  ;;  %v536_v55 = vpack.c.bf16 %v361_v50, %v354_v47  ;;  %v424_v30 = vld [vmem:[%s2745_s26 + $0x4d8] sm:$0xff] }
  0x4a   : > { %2279 = vmatpush.bf16.msrb.mxu3 %v2224_v16  ;;  %v474_v16 = vld [vmem:[%s2745_s26 + $0x668] sm:$0xff] }
  0x4e   : > { %2280 = vmatpush.bf16.msrb.mxu3 %v2223_v19  ;;  %v334_v19 = vld [vmem:[%s2745_s26 + $0x208] sm:$0xff] }
  0x4f   : > { %v523_v25 = vpack.c.bf16 %v334_v19, %v327_v18 }
  0x52   : > { %2281 = vmatpush.bf16.msrb.mxu3 %v2222_v22  ;;  %v593_v22 = vpack.c.bf16 %v474_v16, %v467_v15  ;;  %v390_v15 = vld [vmem:[%s2745_s26 + $0x3c8] sm:$0xff] }
  0x55   : > { %1068 = vmatmul.bf16.gmra.mxu0 %v507_v56  ;;  %1217 = vmatmul.bf16.vlgmr.msrb.gmra.mxu3 %v592_v57  ;;  %v537_v56 = vpack.c.bf16 %v362_v52, %v355_v51  ;;  %v367_v57 = vld [vmem:[%s2745_s26 + $0x310] sm:$0xff] }
  0x56   : > { %2282 = vmatpush.bf16.msra.mxu3 %v2666_v2  ;;  %1157 = vmatmul.bf16.gmra.mxu1 %v508_v58  ;;  %v313_v2 = vld [vmem:[%s2745_s26 + $0x160] sm:$0xff]  ;;  %v374_v58 = vld [vmem:[%s2745_s26 + $0x348] sm:$0xff] }
  0x57   : > { %1246 = vmatmul.bf16.gmra.mxu2 %v509_v59  ;;  %v516_v9 = vpack.c.bf16 %v320_v3, %v313_v2  ;;  %v368_v59 = vld [vmem:[%s2745_s26 + $0x318] sm:$0xff]  ;;  %v542_v1 = vpack.c.bf16 %v374_v58, %v367_v57  ;;  %v503_v2 = vpack.c.bf16 %v293_v61, %v286_v60  ;;  %v410_v61 = vld [vmem:[%s2745_s26 + $0x468] sm:$0xff] }
  0x58   : > { %v543_v3 = vpack.c.bf16 %v375_v62, %v368_v59  ;;  %v409_v59 = vld [vmem:[%s2745_s26 + $0x460] sm:$0xff]  ;;  %v416_v60 = vld [vmem:[%s2745_s26 + $0x498] sm:$0xff] }
  0x59   : > { %v328_v62 = vld [vmem:[%s2745_s26 + $0x1d8] sm:$0xff] }
  0x5a   : > { %2283 = vmatpush.bf16.msra.mxu3 %v2681_v5  ;;  %v2262_v5 = vld [vmem:[%s3522_s1 + $0x180] sm:$0xff] }
  0x5b   : > { %1591 = vmatpush.bf16.msrb.mxu2 %v2262_v5  ;;  %v381_v5 = vld [vmem:[%s2745_s26 + $0x380] sm:$0xff] }
  0x5e   : > { %2284 = vmatpush.bf16.msra.mxu3 %v2696_v8  ;;  %v2253_v8 = vld [vmem:[%s3522_s1 + $0x138] sm:$0xff] }
  0x5f   : > { %1406 = vmatpush.bf16.msrb.mxu0 %v2253_v8  ;;  %v388_v8 = vld [vmem:[%s2745_s26 + $0x3b8] sm:$0xff] }
  0x60   : > { %v549_v16 = vpack.c.bf16 %v388_v8, %v381_v5 }
  0x62   : > { %2285 = vmatpush.bf16.msra.mxu3 %v2712_v11  ;;  %v2245_v11 = vld [vmem:[%s3522_s1 + $0xf8] sm:$0xff] }
  0x63   : > { %1407 = vmatpush.bf16.msrb.mxu0 %v2252_v26 }
  0x65   : > { %1073 = vmatmul.bf16.gmra.mxu0 %v514_v4  ;;  %1222 = vmatmul.bf16.gmra.mxu3 %v599_v6  ;;  %v544_v4 = vpack.c.bf16 %v376_v0, %v369_v63  ;;  %v2251_v6 = vld [vmem:[%s3522_s1 + $0x128] sm:$0xff]  ;;  %v335_v63 = vld [vmem:[%s2745_s26 + $0x210] sm:$0xff]  ;;  %v417_v0 = vld [vmem:[%s2745_s26 + $0x4a0] sm:$0xff] }
  0x66   : > { %2286 = vmatpush.bf16.msra.mxu3 %v2725_v14  ;;  %1162 = vmatmul.bf16.gmra.mxu1 %v515_v7  ;;  %v326_v14 = vld [vmem:[%s2745_s26 + $0x1c8] sm:$0xff] }
  0x67   : > { %1251 = vmatmul.bf16.gmra.mxu2 %v516_v9  ;;  %1408 = vmatpush.bf16.msrb.mxu0 %v2251_v6  ;;  %v2259_v7 = vld [vmem:[%s3522_s1 + $0x168] sm:$0xff]  ;;  %v2893_v9 = vld [vmem:[%s3523_s2] ss:$0 sm:$0xff]  ;;  %v563_v6 = vpack.c.bf16 %v416_v60, %v409_v59 }
  0x68   : > { %1497 = vmatpush.bf16.msrb.mxu1 %v2259_v7  ;;  %v524_v7 = vpack.c.bf16 %v335_v63, %v328_v62  ;;  %v437_v60 = vld [vmem:[%s2745_s26 + $0x540] sm:$0xff]  ;;  %v444_v63 = vld [vmem:[%s2745_s26 + $0x578] sm:$0xff] }
  0x6a   : > { %2287 = vmatpush.bf16.msra.mxu3 %v2737_v17  ;;  %v333_v17 = vld [vmem:[%s2745_s26 + $0x200] sm:$0xff] }
  0x6b   : > { %v522_v24 = vpack.c.bf16 %v333_v17, %v326_v14  ;;  %v383_v14 = vld [vmem:[%s2745_s26 + $0x390] sm:$0xff]  ;;  %1409 = vmatpush.bf16.msrb.mxu0 %v2250_v33 }
  0x6c   : > { %1498 = vmatpush.bf16.msrb.mxu1 %v2258_v34  ;;  %v431_v33 = vld [vmem:[%s2745_s26 + $0x510] sm:$0xff]  ;;  %v425_v34 = vld [vmem:[%s2745_s26 + $0x4e0] sm:$0xff] }
  0x6e   : > { %2288 = vmatpush.bf16.msra.mxu3 %v2754_v20  ;;  %v521_v20 = vpack.c.bf16 %v332_v13, %v325_v12  ;;  %v307_v12 = vld [vmem:[%s2745_s26 + $0x130] sm:$0xff]  ;;  %v389_v13 = vld [vmem:[%s2745_s26 + $0x3c0] sm:$0xff] }
  0x6f   : > { %v550_v19 = vpack.c.bf16 %v389_v13, %v382_v10  ;;  %v564_v10 = vpack.c.bf16 %v417_v0, %v410_v61  ;;  %v2247_v0 = vld [vmem:[%s3522_s1 + $0x108] sm:$0xff] }
  0x72   : > { %2289 = vmatpush.bf16.msra.mxu3 %v2765_v23  ;;  %v2243_v23 = vld [vmem:[%s3522_s1 + $0xe8] sm:$0xff] }
  0x75   : > { %1078 = vmatmul.bf16.gmra.mxu0 %v521_v20  ;;  %1306 = vmatmul.bf16.vlgmr.msra.gmra.mxu3 %v593_v22 }
  0x76   : > { %1317 = vmatpush.bf16.msrb.mxu3 %v2245_v11  ;;  %1167 = vmatmul.bf16.gmra.mxu1 %v522_v24  ;;  %v300_v11 = vld [vmem:[%s2745_s26 + $0xf8] sm:$0xff] }
  0x77   : > { %1256 = vmatmul.bf16.gmra.mxu2 %v523_v25  ;;  %v510_v17 = vpack.c.bf16 %v307_v12, %v300_v11 }
  0x7a   : > { %1318 = vmatpush.bf16.msrb.mxu3 %v2244_v21  ;;  %v551_v21 = vpack.c.bf16 %v390_v15, %v383_v14 }
  0x7e   : > { %1319 = vmatpush.bf16.msrb.mxu3 %v2243_v23 }
  0x82   : > { %1320 = vmatpush.bf16.msrb.mxu3 %v2242_v27 }
  0x85   : > { %1083 = vmatmul.bf16.gmra.mxu0 %v528_v38  ;;  %1311 = vmatmul.bf16.gmra.mxu3 %v600_v39  ;;  %v403_v38 = vld [vmem:[%s2745_s26 + $0x430] sm:$0xff]  ;;  %v397_v39 = vld [vmem:[%s2745_s26 + $0x400] sm:$0xff] }
  0x86   : > { %1321 = vmatpush.bf16.msrb.mxu3 %v2241_v28  ;;  %1172 = vmatmul.bf16.gmra.mxu1 %v529_v40  ;;  %v404_v40 = vld [vmem:[%s2745_s26 + $0x438] sm:$0xff]  ;;  %v557_v47 = vpack.c.bf16 %v403_v38, %v396_v35 }
  0x87   : > { %1261 = vmatmul.bf16.gmra.mxu2 %v530_v41  ;;  %v558_v48 = vpack.c.bf16 %v404_v40, %v397_v39  ;;  %v432_v35 = vld [vmem:[%s2745_s26 + $0x518] sm:$0xff] }
  0x8a   : > { %1322 = vmatpush.bf16.msrb.mxu3 %v2240_v37  ;;  %v321_v37 = vld [vmem:[%s2745_s26 + $0x1a0] sm:$0xff] }
  0x8e   : > { %1323 = vmatpush.bf16.msrb.mxu3 %v2239_v42 }
  0x92   : > { %1324 = vmatpush.bf16.msrb.mxu3 %v2238_v44  ;;  %v517_v44 = vpack.c.bf16 %v321_v37, %v314_v36 }
  0x95   : > { %1088 = vmatmul.bf16.gmra.mxu0 %v535_v53  ;;  %1325 = vmatmul.bf16.vlgmr.msrb.gmra.mxu3 %v496_v54 }
  0x96   : > { %1177 = vmatmul.bf16.gmra.mxu1 %v536_v55 }
  0x97   : > { %1266 = vmatmul.bf16.gmra.mxu2 %v537_v56 }
  0xa5   : > { %1093 = vmatmul.bf16.gmra.mxu0 %v542_v1  ;;  %1330 = vmatmul.bf16.gmra.mxu3 %v503_v2  ;;  %v411_v1 = vld [vmem:[%s2745_s26 + $0x470] sm:$0xff]  ;;  %v418_v2 = vld [vmem:[%s2745_s26 + $0x4a8] sm:$0xff] }
  0xa6   : > { %1182 = vmatmul.bf16.gmra.mxu1 %v543_v3  ;;  %v565_v11 = vpack.c.bf16 %v418_v2, %v411_v1  ;;  %v2255_v1 = vld [vmem:[%s3522_s1 + $0x148] sm:$0xff] }
  0xa7   : > { %1271 = vmatmul.bf16.gmra.mxu2 %v544_v4  ;;  %v438_v2 = vld [vmem:[%s2745_s26 + $0x548] sm:$0xff] }
  0xb2   : > { %v1059_v18 = vpop.f32.mrf.mxu0 }
  0xb3   : > { %v1060_v20 = vadd.f32 %v2893_v9, %v1059_v18  ;;  %v1148_v22 = vpop.f32.mrf.mxu1 }
  0xb5   : > { %v1149_v24 = vadd.f32 %v1148_v22, %v1060_v20  ;;  %1098 = vmatmul.bf16.gmra.mxu0 %v549_v16  ;;  %1335 = vmatmul.bf16.gmra.mxu3 %v510_v17  ;;  %v2249_v20 = vld [vmem:[%s3522_s1 + $0x118] sm:$0xff] }
  0xb6   : > { %1187 = vmatmul.bf16.gmra.mxu1 %v550_v19  ;;  %1410 = vmatpush.bf16.msrb.mxu0 %v2249_v20 }
  0xb7   : > { %1276 = vmatmul.bf16.gmra.mxu2 %v551_v21 }
  0xb8   : > { %v1129_v25 = vpop.f32.mrf.mxu3 }
  0xb9   : > { %v1130_v14 = vadd.f32 %v2893_v9, %v1129_v25 }
  0xba   : > { %v1237_v23 = vpop.f32.mrf.mxu2  ;;  %v1061_v27 = vpop.f32.mrf.mxu0 }
  0xbb   : > { %v2904_v26 = vadd.f32 %v1237_v23, %v1149_v24  ;;  %v1062_v28 = vadd.f32 %v2893_v9, %v1061_v27  ;;  %v1150_v29 = vpop.f32.mrf.mxu1  ;;  %v423_v27 = vld [vmem:[%s2745_s26 + $0x4d0] sm:$0xff] }
  0xbd   : > { %v1151_v31 = vadd.f32 %v1150_v29, %v1062_v28  ;;  %v430_v28 = vld [vmem:[%s2745_s26 + $0x508] sm:$0xff]  ;;  %v2257_v29 = vld [vmem:[%s3522_s1 + $0x158] sm:$0xff] }
  0xbe   : > { %1499 = vmatpush.bf16.msrb.mxu1 %v2257_v29  ;;  %v570_v39 = vpack.c.bf16 %v430_v28, %v423_v27 }
  0xc0   : > { %v1131_v41 = vpop.f32.mrf.mxu3 }
  0xc1   : > { %v1132_v25 = vadd.f32 %v2893_v9, %v1131_v41 }
  0xc2   : > { %v1239_v42 = vpop.f32.mrf.mxu2  ;;  %v1064_v46 = vpop.f32.mrf.mxu0 }
  0xc3   : > { %v2921_v45 = vadd.f32 %v1239_v42, %v1151_v31  ;;  %v1065_v49 = vadd.f32 %v2893_v9, %v1064_v46  ;;  %v1153_v50 = vpop.f32.mrf.mxu1  ;;  %v342_v31 = vld [vmem:[%s2745_s26 + $0x248] sm:$0xff] }
  0xc4   : > { %v531_v40 = vpack.c.bf16 %v349_v32, %v342_v31 }
  0xc5   : > { %v1154_v51 = vadd.f32 %v1153_v50, %v1065_v49  ;;  %1103 = vmatmul.bf16.gmra.mxu0 %v556_v43  ;;  %1340 = vmatmul.bf16.gmra.mxu3 %v517_v44  ;;  %v571_v43 = vpack.c.bf16 %v431_v33, %v424_v30  ;;  %v572_v44 = vpack.c.bf16 %v432_v35, %v425_v34  ;;  %v451_v35 = vld [vmem:[%s2745_s26 + $0x5b0] sm:$0xff] }
  0xc6   : > { %1192 = vmatmul.bf16.gmra.mxu1 %v557_v47 }
  0xc7   : > { %1281 = vmatmul.bf16.gmra.mxu2 %v558_v48 }
  0xc8   : > { %v2924_v52 = vpop.f32.mrf.mxu3 }
  0xc9   : > { %v1135_v48 = vadd.f32 %v2893_v9, %v2924_v52  ;;  %v2256_v52 = vld [vmem:[%s3522_s1 + $0x150] sm:$0xff] }
  0xca   : > { %v1242_v53 = vpop.f32.mrf.mxu2  ;;  %v1066_v55 = vpop.f32.mrf.mxu0  ;;  %1500 = vmatpush.bf16.msrb.mxu1 %v2256_v52 }
  0xcb   : > { %v2926_v54 = vadd.f32 %v1242_v53, %v1154_v51  ;;  %v1067_v56 = vadd.f32 %v2893_v9, %v1066_v55  ;;  %v1155_v57 = vpop.f32.mrf.mxu1  ;;  %v2248_v55 = vld [vmem:[%s3522_s1 + $0x110] sm:$0xff] }
  0xcc   : > { %1411 = vmatpush.bf16.msrb.mxu0 %v2248_v55 }
  0xcd   : > { %v1156_v58 = vadd.f32 %v1155_v57, %v1067_v56 }
  0xce   : > { %1501 = vmatpush.bf16.msrb.mxu1 %v2255_v1 }
  0xd0   : > { %v2937_v3 = vpop.f32.mrf.mxu3  ;;  %1412 = vmatpush.bf16.msrb.mxu0 %v2247_v0 }
  0xd1   : > { %v1137_v61 = vadd.f32 %v2893_v9, %v2937_v3 }
  0xd2   : > { %v1244_v4 = vpop.f32.mrf.mxu2  ;;  %v1069_v8 = vpop.f32.mrf.mxu0 }
  0xd3   : > { %v2939_v5 = vadd.f32 %v1244_v4, %v1156_v58  ;;  %v1070_v12 = vadd.f32 %v2893_v9, %v1069_v8  ;;  %v1158_v13 = vpop.f32.mrf.mxu1  ;;  %v356_v4 = vld [vmem:[%s2745_s26 + $0x2b8] sm:$0xff]  ;;  %v439_v8 = vld [vmem:[%s2745_s26 + $0x550] sm:$0xff] }
  0xd5   : > { %v1159_v15 = vadd.f32 %v1158_v13, %v1070_v12  ;;  %1108 = vmatmul.bf16.gmra.mxu0 %v563_v6  ;;  %1345 = vmatmul.bf16.gmra.mxu3 %v524_v7  ;;  %v363_v6 = vld [vmem:[%s2745_s26 + $0x2f0] sm:$0xff]  ;;  %v445_v7 = vld [vmem:[%s2745_s26 + $0x580] sm:$0xff]  ;;  %v577_v13 = vpack.c.bf16 %v444_v63, %v437_v60 }
  0xd6   : > { %1197 = vmatmul.bf16.gmra.mxu1 %v564_v10  ;;  %v446_v10 = vld [vmem:[%s2745_s26 + $0x588] sm:$0xff]  ;;  %v578_v20 = vpack.c.bf16 %v445_v7, %v438_v2  ;;  %v273_v7 = vld [vmem:[%s2745_s26 + $0x20] sm:$0xff] }
  0xd7   : > { %1286 = vmatmul.bf16.gmra.mxu2 %v565_v11 }
  0xd8   : > { %v1218_v16 = vpop.f32.mrf.mxu3 }
  0xd9   : > { %v2943_v17 = vadd.f32 %v1218_v16, %v1130_v14  ;;  %v538_v14 = vpack.c.bf16 %v363_v6, %v356_v4  ;;  %v2254_v16 = vld [vmem:[%s3522_s1 + $0x140] sm:$0xff]  ;;  %v384_v4 = vld [vmem:[%s2745_s26 + $0x398] sm:$0xff]  ;;  %v391_v6 = vld [vmem:[%s2745_s26 + $0x3d0] sm:$0xff] }
  0xda   : > { %v1247_v18 = vpop.f32.mrf.mxu2  ;;  %v1071_v21 = vpop.f32.mrf.mxu0  ;;  %1502 = vmatpush.bf16.msrb.mxu1 %v2254_v16  ;;  %v552_v16 = vpack.c.bf16 %v391_v6, %v384_v4 }
  0xdb   : > { %v2945_v19 = vadd.f32 %v1247_v18, %v1159_v15  ;;  %v1072_v22 = vadd.f32 %v2893_v9, %v1071_v21  ;;  %v1160_v24 = vpop.f32.mrf.mxu1  ;;  %v2246_v15 = vld [vmem:[%s3522_s1 + $0x100] sm:$0xff] }
  0xdc   : > { %1413 = vmatpush.bf16.msrb.mxu0 %v2246_v15 }
  0xdd   : > { %v1161_v23 = vadd.f32 %v1160_v24, %v1072_v22  ;;  %v579_v22 = vpack.c.bf16 %v446_v10, %v439_v8  ;;  %v280_v8 = vld [vmem:[%s2745_s26 + $0x58] sm:$0xff]  ;;  %v274_v10 = vld [vmem:[%s2745_s26 + $0x28] sm:$0xff] }
  0xe0   : > { %v1220_v36 = vpop.f32.mrf.mxu3 }
  0xe1   : > { %v2963_v37 = vadd.f32 %v1220_v36, %v1132_v25  ;;  %v458_v36 = vld [vmem:[%s2745_s26 + $0x5e8] sm:$0xff] }
  0xe2   : > { %v1249_v38 = vpop.f32.mrf.mxu2  ;;  %v1074_v42 = vpop.f32.mrf.mxu0 }
  0xe3   : > { %v2965_v41 = vadd.f32 %v1249_v38, %v1161_v23  ;;  %v1075_v46 = vadd.f32 %v2893_v9, %v1074_v42  ;;  %v1163_v47 = vpop.f32.mrf.mxu1  ;;  %v452_v38 = vld [vmem:[%s2745_s26 + $0x5b8] sm:$0xff]  ;;  %v459_v42 = vld [vmem:[%s2745_s26 + $0x5f0] sm:$0xff] }
  0xe4   : > { %v585_v55 = vpack.c.bf16 %v459_v42, %v452_v38  ;;  %v287_v42 = vld [vmem:[%s2745_s26 + $0x90] sm:$0xff] }
  0xe5   : > { %v1164_v49 = vadd.f32 %v1163_v47, %v1075_v46  ;;  %1113 = vmatmul.bf16.gmra.mxu0 %v570_v39  ;;  %1350 = vmatmul.bf16.gmra.mxu3 %v531_v40  ;;  %v370_v39 = vld [vmem:[%s2745_s26 + $0x328] sm:$0xff]  ;;  %v377_v40 = vld [vmem:[%s2745_s26 + $0x360] sm:$0xff] }
  0xe6   : > { %1202 = vmatmul.bf16.gmra.mxu1 %v571_v43  ;;  %v453_v43 = vld [vmem:[%s2745_s26 + $0x5c0] sm:$0xff] }
  0xe7   : > { %1291 = vmatmul.bf16.gmra.mxu2 %v572_v44  ;;  %v460_v44 = vld [vmem:[%s2745_s26 + $0x5f8] sm:$0xff] }
  0xe8   : > { %v1223_v50 = vpop.f32.mrf.mxu3  ;;  %v586_v52 = vpack.c.bf16 %v460_v44, %v453_v43  ;;  %v294_v43 = vld [vmem:[%s2745_s26 + $0xc8] sm:$0xff]  ;;  %v288_v44 = vld [vmem:[%s2745_s26 + $0x98] sm:$0xff] }
  0xe9   : > { %v2970_v51 = vadd.f32 %v1223_v50, %v1135_v48  ;;  %v584_v48 = vpack.c.bf16 %v458_v36, %v451_v35 }
  0xea   : > { %v1252_v53 = vpop.f32.mrf.mxu2  ;;  %v1076_v57 = vpop.f32.mrf.mxu0 }
  0xeb   : > { %v2978_v56 = vadd.f32 %v1252_v53, %v1164_v49  ;;  %v1077_v58 = vadd.f32 %v2893_v9, %v1076_v57  ;;  %v1165_v59 = vpop.f32.mrf.mxu1  ;;  %v545_v49 = vpack.c.bf16 %v377_v40, %v370_v39  ;;  %v398_v39 = vld [vmem:[%s2745_s26 + $0x408] sm:$0xff]  ;;  %v405_v40 = vld [vmem:[%s2745_s26 + $0x440] sm:$0xff] }
  0xed   : > { %v1166_v62 = vadd.f32 %v1165_v59, %v1077_v58 }
  0xf0   : > { %v1225_v11 = vpop.f32.mrf.mxu3 }
  0xf1   : > { %v2997_v3 = vadd.f32 %v1225_v11, %v1137_v61  ;;  %v281_v11 = vld [vmem:[%s2745_s26 + $0x60] sm:$0xff] }
  0xf2   : > { %v1254_v12 = vpop.f32.mrf.mxu2  ;;  %v1079_v21 = vpop.f32.mrf.mxu0 }
  0xf3   : > { %v3005_v18 = vadd.f32 %v1254_v12, %v1166_v62  ;;  %v1080_v24 = vadd.f32 %v2893_v9, %v1079_v21  ;;  %v1168_v25 = vpop.f32.mrf.mxu1  ;;  %v275_v12 = vld [vmem:[%s2745_s26 + $0x30] sm:$0xff]  ;;  %v497_v21 = vpack.c.bf16 %v280_v8, %v273_v7 }
  0xf5   : > { %v1169_v23 = vadd.f32 %v1168_v25, %v1080_v24  ;;  %1118 = vmatmul.bf16.gmra.mxu0 %v577_v13  ;;  %1355 = vmatmul.bf16.gmra.mxu3 %v538_v14  ;;  %v282_v13 = vld [vmem:[%s2745_s26 + $0x68] sm:$0xff]  ;;  %v498_v24 = vpack.c.bf16 %v281_v11, %v274_v10  ;;  %v412_v11 = vld [vmem:[%s2745_s26 + $0x478] sm:$0xff] }
  0xf6   : > { %1207 = vmatmul.bf16.gmra.mxu1 %v578_v20  ;;  %v499_v25 = vpack.c.bf16 %v282_v13, %v275_v12  ;;  %v419_v12 = vld [vmem:[%s2745_s26 + $0x4b0] sm:$0xff]  ;;  %v301_v13 = vld [vmem:[%s2745_s26 + $0x100] sm:$0xff] }
  0xf7   : > { %1296 = vmatmul.bf16.gmra.mxu2 %v579_v22 }
  0xf8   : > { %v1307_v27 = vpop.f32.mrf.mxu3 }
  0xf9   : > { %v3009_v29 = vadd.f32 %v1307_v27, %v2943_v17 }
  0xfa   : > { %v1257_v28 = vpop.f32.mrf.mxu2  ;;  %v1081_v31 = vpop.f32.mrf.mxu0 }
  0xfb   : > { %3530 = vst [vmem:[#allocation8_spill] sm:$0xff] %v3009_v29  ;;  %v3011_v30 = vadd.f32 %v1257_v28, %v1169_v23  ;;  %v1082_v32 = vadd.f32 %v2893_v9, %v1081_v31  ;;  %v1170_v33 = vpop.f32.mrf.mxu1 }
  0xfd   : > { %v1171_v34 = vadd.f32 %v1170_v33, %v1082_v32 }
 0x100   : > { %v1309_v46 = vpop.f32.mrf.mxu3 }
 0x101   : > { %v3023_v17 = vadd.f32 %v1309_v46, %v2963_v37  ;;  %v295_v46 = vld [vmem:[%s2745_s26 + $0xd0] sm:$0xff] }
 0x102   : > { %v1259_v47 = vpop.f32.mrf.mxu2  ;;  %v1084_v53 = vpop.f32.mrf.mxu0 }
 0x103   : > { %3531 = vst [vmem:[#allocation9_spill] sm:$0xff] %v3023_v17  ;;  %v3025_v50 = vadd.f32 %v1259_v47, %v1171_v34  ;;  %v1085_v57 = vadd.f32 %v2893_v9, %v1084_v53  ;;  %v1173_v58 = vpop.f32.mrf.mxu1  ;;  %v289_v47 = vld [vmem:[%s2745_s26 + $0xa0] sm:$0xff] }
 0x105   : > { %v1174_v59 = vadd.f32 %v1173_v58, %v1085_v57  ;;  %1123 = vmatmul.bf16.gmra.mxu0 %v584_v48  ;;  %1360 = vmatmul.bf16.gmra.mxu3 %v545_v49  ;;  %v296_v48 = vld [vmem:[%s2745_s26 + $0xd8] sm:$0xff] }
 0x106   : > { %1212 = vmatmul.bf16.gmra.mxu1 %v585_v55  ;;  %v559_v55 = vpack.c.bf16 %v405_v40, %v398_v39 }
 0x107   : > { %1301 = vmatmul.bf16.gmra.mxu2 %v586_v52  ;;  %v504_v52 = vpack.c.bf16 %v294_v43, %v287_v42 }
 0x108   : > { %v1312_v37 = vpop.f32.mrf.mxu3 }
 0x109   : > { %v3029_v61 = vadd.f32 %v1312_v37, %v2970_v51  ;;  %v506_v37 = vpack.c.bf16 %v296_v48, %v289_v47  ;;  %v426_v48 = vld [vmem:[%s2745_s26 + $0x4e8] sm:$0xff] }
 0x10a   : > { %v1262_v60 = vpop.f32.mrf.mxu2  ;;  %v1086_v63 = vpop.f32.mrf.mxu0 }
 0x10b   : > { %3532 = vst [vmem:[#allocation10_spill] sm:$0xff] %v3029_v61  ;;  %v3031_v62 = vadd.f32 %v1262_v60, %v1174_v59  ;;  %v1087_v0 = vadd.f32 %v2893_v9, %v1086_v63  ;;  %v1175_v1 = vpop.f32.mrf.mxu1  ;;  %v505_v59 = vpack.c.bf16 %v295_v46, %v288_v44 }
 0x10d   : > { %v1176_v2 = vadd.f32 %v1175_v1, %v1087_v0 }
 0x110   : > { %v1314_v14 = vpop.f32.mrf.mxu3 }
 0x111   : > { %v3043_v51 = vadd.f32 %v1314_v14, %v2997_v3  ;;  %v308_v14 = vld [vmem:[%s2745_s26 + $0x138] sm:$0xff] }
 0x112   : > { %v1264_v15 = vpop.f32.mrf.mxu2  ;;  %v1089_v22 = vpop.f32.mrf.mxu0 }
 0x113   : > { %3533 = vst [vmem:[#allocation11_spill] sm:$0xff] %v3043_v51  ;;  %v3045_v20 = vadd.f32 %v1264_v15, %v1176_v2  ;;  %v1090_v23 = vadd.f32 %v2893_v9, %v1089_v22  ;;  %v1178_v27 = vpop.f32.mrf.mxu1  ;;  %v302_v15 = vld [vmem:[%s2745_s26 + $0x108] sm:$0xff]  ;;  %v484_v51 = vld [vmem:[%s2745_s26 + $0x6b8] sm:$0xff] }
 0x114   : > { %v310_v22 = vld [vmem:[%s2745_s26 + $0x148] sm:$0xff] }
 0x115   : > { %v1179_v28 = vadd.f32 %v1178_v27, %v1090_v23  ;;  %1365 = vmatmul.bf16.gmra.mxu3 %v552_v16  ;;  %1414 = vmatmul.bf16.vlgmr.msrb.gmra.mxu0 %v497_v21  ;;  %v309_v16 = vld [vmem:[%s2745_s26 + $0x140] sm:$0xff]  ;;  %v303_v21 = vld [vmem:[%s2745_s26 + $0x110] sm:$0xff]  ;;  %v566_v23 = vpack.c.bf16 %v419_v12, %v412_v11  ;;  %v511_v27 = vpack.c.bf16 %v308_v14, %v301_v13 }
 0x116   : > { %1503 = vmatmul.bf16.vlgmr.msrb.gmra.mxu1 %v498_v24 }
 0x117   : > { %2186 = vmatmul.msk.bf16.vlgmr.msrb.gmra.mxu2 %vm1001_vm0, %v499_v25 }
 0x118   : > { %v1326_v3 = vpop.f32.mrf.mxu3 }
 0x119   : > { %v3050_v32 = vadd.f32 %v1326_v3, %v2904_v26 }
 0x11a   : > { %v1267_v31 = vpop.f32.mrf.mxu2  ;;  %v1091_v34 = vpop.f32.mrf.mxu0 }
 0x11b   : > { %v3052_v33 = vadd.f32 %v1267_v31, %v1179_v28  ;;  %v1092_v35 = vadd.f32 %v2893_v9, %v1091_v34  ;;  %v1180_v36 = vpop.f32.mrf.mxu1  ;;  %v512_v31 = vpack.c.bf16 %v309_v16, %v302_v15  ;;  %v513_v34 = vpack.c.bf16 %v310_v22, %v303_v21 }
 0x11d   : > { %v1181_v38 = vadd.f32 %v1180_v36, %v1092_v35 }
 0x120   : > { %v1328_v49 = vpop.f32.mrf.mxu3 }
 0x121   : > { %v3064_v26 = vadd.f32 %v1328_v49, %v2921_v45  ;;  %v433_v49 = vld [vmem:[%s2745_s26 + $0x520] sm:$0xff] }
 0x122   : > { %v1269_v53 = vpop.f32.mrf.mxu2  ;;  %v1094_v58 = vpop.f32.mrf.mxu0 }
 0x123   : > { %v3066_v57 = vadd.f32 %v1269_v53, %v1181_v38  ;;  %v1095_v60 = vadd.f32 %v2893_v9, %v1094_v58  ;;  %v1183_v63 = vpop.f32.mrf.mxu1  ;;  %v315_v53 = vld [vmem:[%s2745_s26 + $0x170] sm:$0xff] }
 0x124   : > { %v323_v58 = vld [vmem:[%s2745_s26 + $0x1b0] sm:$0xff] }
 0x125   : > { %v1184_v0 = vadd.f32 %v1183_v63, %v1095_v60  ;;  %1370 = vmatmul.bf16.gmra.mxu3 %v559_v55  ;;  %1419 = vmatmul.bf16.gmra.mxu0 %v504_v52  ;;  %v322_v55 = vld [vmem:[%s2745_s26 + $0x1a8] sm:$0xff]  ;;  %v316_v52 = vld [vmem:[%s2745_s26 + $0x178] sm:$0xff] }
 0x126   : > { %1508 = vmatmul.bf16.gmra.mxu1 %v505_v59  ;;  %v317_v59 = vld [vmem:[%s2745_s26 + $0x180] sm:$0xff] }
 0x127   : > { %2187 = vmatmul.msk.bf16.gmra.mxu2 %vm1001_vm0, %v506_v37  ;;  %v324_v37 = vld [vmem:[%s2745_s26 + $0x1b8] sm:$0xff] }
 0x128   : > { %v1331_v45 = vpop.f32.mrf.mxu3 }
 0x129   : > { %v3071_v2 = vadd.f32 %v1331_v45, %v2926_v54  ;;  %v518_v45 = vpack.c.bf16 %v322_v55, %v315_v53 }
 0x12a   : > { %v1272_v1 = vpop.f32.mrf.mxu2  ;;  %v1096_v6 = vpop.f32.mrf.mxu0 }
 0x12b   : > { %v3073_v4 = vadd.f32 %v1272_v1, %v1184_v0  ;;  %v1097_v7 = vadd.f32 %v2893_v9, %v1096_v6  ;;  %v1185_v8 = vpop.f32.mrf.mxu1  ;;  %v573_v0 = vpack.c.bf16 %v433_v49, %v426_v48 }
 0x12d   : > { %v1186_v10 = vadd.f32 %v1185_v8, %v1097_v7  ;;  %v519_v7 = vpack.c.bf16 %v323_v58, %v316_v52  ;;  %v520_v8 = vpack.c.bf16 %v324_v37, %v317_v59 }
 0x130   : > { %v1333_v24 = vpop.f32.mrf.mxu3 }
 0x131   : > { %v3085_v54 = vadd.f32 %v1333_v24, %v2939_v5 }
 0x132   : > { %v1274_v25 = vpop.f32.mrf.mxu2  ;;  %v1099_v3 = vpop.f32.mrf.mxu0 }
 0x133   : > { %v3087_v28 = vadd.f32 %v1274_v25, %v1186_v10  ;;  %v1100_v35 = vadd.f32 %v2893_v9, %v1099_v3  ;;  %v1188_v36 = vpop.f32.mrf.mxu1  ;;  %v440_v25 = vld [vmem:[%s2745_s26 + $0x558] sm:$0xff] }
 0x134   : > { %v336_v3 = vld [vmem:[%s2745_s26 + $0x218] sm:$0xff] }
 0x135   : > { %v1189_v38 = vadd.f32 %v1188_v36, %v1100_v35  ;;  %1375 = vmatmul.bf16.gmra.mxu3 %v566_v23  ;;  %1424 = vmatmul.bf16.gmra.mxu0 %v511_v27  ;;  %v447_v23 = vld [vmem:[%s2745_s26 + $0x590] sm:$0xff]  ;;  %v329_v27 = vld [vmem:[%s2745_s26 + $0x1e0] sm:$0xff]  ;;  %v338_v36 = vld [vmem:[%s2745_s26 + $0x228] sm:$0xff] }
 0x136   : > { %1513 = vmatmul.bf16.gmra.mxu1 %v512_v31  ;;  %v330_v31 = vld [vmem:[%s2745_s26 + $0x1e8] sm:$0xff]  ;;  %v331_v35 = vld [vmem:[%s2745_s26 + $0x1f0] sm:$0xff] }
 0x137   : > { %2188 = vmatmul.msk.bf16.gmra.mxu2 %vm1001_vm0, %v513_v34  ;;  %v337_v34 = vld [vmem:[%s2745_s26 + $0x220] sm:$0xff]  ;;  %v527_v48 = vpack.c.bf16 %v338_v36, %v331_v35 }
 0x138   : > { %v1336_v5 = vpop.f32.mrf.mxu3 }
 0x139   : > { %v3092_v40 = vadd.f32 %v1336_v5, %v2945_v19 }
 0x13a   : > { %v1277_v39 = vpop.f32.mrf.mxu2  ;;  %v1101_v43 = vpop.f32.mrf.mxu0 }
 0x13b   : > { %v3094_v42 = vadd.f32 %v1277_v39, %v1189_v38  ;;  %v1102_v44 = vadd.f32 %v2893_v9, %v1101_v43  ;;  %v1190_v46 = vpop.f32.mrf.mxu1  ;;  %v580_v39 = vpack.c.bf16 %v447_v23, %v440_v25  ;;  %v525_v43 = vpack.c.bf16 %v336_v3, %v329_v27 }
 0x13d   : > { %v1191_v47 = vadd.f32 %v1190_v46, %v1102_v44 }
 0x140   : > { %v1338_v60 = vpop.f32.mrf.mxu3 }
 0x141   : > { %v3106_v19 = vadd.f32 %v1338_v60, %v2965_v41 }
 0x142   : > { %v1279_v63 = vpop.f32.mrf.mxu2  ;;  %v1104_v6 = vpop.f32.mrf.mxu0 }
 0x143   : > { %v3108_v1 = vadd.f32 %v1279_v63, %v1191_v47  ;;  %v1105_v10 = vadd.f32 %v2893_v9, %v1104_v6  ;;  %v1193_v11 = vpop.f32.mrf.mxu1  ;;  %v526_v47 = vpack.c.bf16 %v337_v34, %v330_v31  ;;  %v461_v6 = vld [vmem:[%s2745_s26 + $0x600] sm:$0xff] }
 0x145   : > { %v1194_v12 = vadd.f32 %v1193_v11, %v1105_v10  ;;  %1380 = vmatmul.bf16.gmra.mxu3 %v573_v0  ;;  %1429 = vmatmul.bf16.gmra.mxu0 %v518_v45  ;;  %v454_v45 = vld [vmem:[%s2745_s26 + $0x5c8] sm:$0xff]  ;;  %v344_v10 = vld [vmem:[%s2745_s26 + $0x258] sm:$0xff]  ;;  %v351_v11 = vld [vmem:[%s2745_s26 + $0x290] sm:$0xff] }
 0x146   : > { %1518 = vmatmul.bf16.gmra.mxu1 %v519_v7  ;;  %v343_v7 = vld [vmem:[%s2745_s26 + $0x250] sm:$0xff] }
 0x147   : > { %2189 = vmatmul.msk.bf16.gmra.mxu2 %vm1001_vm0, %v520_v8  ;;  %v350_v8 = vld [vmem:[%s2745_s26 + $0x288] sm:$0xff] }
 0x148   : > { %v1341_v41 = vpop.f32.mrf.mxu3 }
 0x149   : > { %v3113_v14 = vadd.f32 %v1341_v41, %v2978_v56  ;;  %v352_v41 = vld [vmem:[%s2745_s26 + $0x298] sm:$0xff] }
 0x14a   : > { %v1282_v13 = vpop.f32.mrf.mxu2  ;;  %v1106_v16 = vpop.f32.mrf.mxu0 }
 0x14b   : > { %v3115_v15 = vadd.f32 %v1282_v13, %v1194_v12  ;;  %v1107_v21 = vadd.f32 %v2893_v9, %v1106_v16  ;;  %v1195_v22 = vpop.f32.mrf.mxu1  ;;  %v345_v12 = vld [vmem:[%s2745_s26 + $0x260] sm:$0xff]  ;;  %v587_v16 = vpack.c.bf16 %v461_v6, %v454_v45 }
 0x14c   : > { %v534_v25 = vpack.c.bf16 %v352_v41, %v345_v12 }
 0x14d   : > { %v1196_v24 = vadd.f32 %v1195_v22, %v1107_v21  ;;  %v532_v21 = vpack.c.bf16 %v350_v8, %v343_v7 }
 0x150   : > { %v1343_v38 = vpop.f32.mrf.mxu3 }
 0x151   : > { %v3127_v56 = vadd.f32 %v1343_v38, %v3005_v18 }
 0x152   : > { %v1284_v5 = vpop.f32.mrf.mxu2  ;;  %v1109_v46 = vpop.f32.mrf.mxu0 }
 0x153   : > { %v3129_v44 = vadd.f32 %v1284_v5, %v1196_v24  ;;  %v1110_v49 = vadd.f32 %v2893_v9, %v1109_v46  ;;  %v1198_v53 = vpop.f32.mrf.mxu1  ;;  %v533_v24 = vpack.c.bf16 %v351_v11, %v344_v10  ;;  %v357_v46 = vld [vmem:[%s2745_s26 + $0x2c0] sm:$0xff] }
 0x155   : > { %v1199_v55 = vadd.f32 %v1198_v53, %v1110_v49  ;;  %1385 = vmatmul.bf16.gmra.mxu3 %v580_v39  ;;  %1434 = vmatmul.bf16.gmra.mxu0 %v525_v43  ;;  %v468_v39 = vld [vmem:[%s2745_s26 + $0x638] sm:$0xff]  ;;  %v475_v43 = vld [vmem:[%s2745_s26 + $0x670] sm:$0xff]  ;;  %v365_v49 = vld [vmem:[%s2745_s26 + $0x300] sm:$0xff] }
 0x156   : > { %1523 = vmatmul.bf16.gmra.mxu1 %v526_v47  ;;  %v364_v47 = vld [vmem:[%s2745_s26 + $0x2f8] sm:$0xff]  ;;  %v359_v53 = vld [vmem:[%s2745_s26 + $0x2d0] sm:$0xff] }
 0x157   : > { %2190 = vmatmul.msk.bf16.gmra.mxu2 %vm1001_vm0, %v527_v48  ;;  %v358_v48 = vld [vmem:[%s2745_s26 + $0x2c8] sm:$0xff] }
 0x158   : > { %v1346_v18 = vpop.f32.mrf.mxu3 }
 0x159   : > { %v3134_v58 = vadd.f32 %v1346_v18, %v3011_v30 }
 0x15a   : > { %v1287_v52 = vpop.f32.mrf.mxu2  ;;  %v1111_v37 = vpop.f32.mrf.mxu0 }
 0x15b   : > { %v3136_v59 = vadd.f32 %v1287_v52, %v1199_v55  ;;  %v1112_v60 = vadd.f32 %v2893_v9, %v1111_v37  ;;  %v1200_v63 = vpop.f32.mrf.mxu1  ;;  %v366_v55 = vld [vmem:[%s2745_s26 + $0x308] sm:$0xff]  ;;  %v594_v52 = vpack.c.bf16 %v475_v43, %v468_v39  ;;  %v539_v37 = vpack.c.bf16 %v364_v47, %v357_v46 }
 0x15c   : > { %v541_v45 = vpack.c.bf16 %v366_v55, %v359_v53 }
 0x15d   : > { %v1201_v0 = vadd.f32 %v1200_v63, %v1112_v60 }
 0x162   : > { %v1289_v13 = vpop.f32.mrf.mxu2  ;;  %v1114_v22 = vpop.f32.mrf.mxu0 }
 0x163   : > { %v3147_v30 = vadd.f32 %v1289_v13, %v1201_v0  ;;  %v1115_v23 = vadd.f32 %v2893_v9, %v1114_v22  ;;  %v1203_v27 = vpop.f32.mrf.mxu1  ;;  %v540_v0 = vpack.c.bf16 %v365_v49, %v358_v48  ;;  %v489_v22 = vld [vmem:[%s2745_s26 + $0x6e0] sm:$0xff] }
 0x165   : > { %v1204_v3 = vadd.f32 %v1203_v27, %v1115_v23  ;;  %1390 = vmatmul.bf16.gmra.mxu3 %v587_v16  ;;  %1439 = vmatmul.bf16.gmra.mxu0 %v532_v21  ;;  %v482_v21 = vld [vmem:[%s2745_s26 + $0x6a8] sm:$0xff]  ;;  %v372_v23 = vld [vmem:[%s2745_s26 + $0x338] sm:$0xff]  ;;  %v379_v27 = vld [vmem:[%s2745_s26 + $0x370] sm:$0xff] }
 0x166   : > { %1528 = vmatmul.bf16.gmra.mxu1 %v533_v24  ;;  %v371_v24 = vld [vmem:[%s2745_s26 + $0x330] sm:$0xff]  ;;  %v547_v43 = vpack.c.bf16 %v379_v27, %v372_v23 }
 0x167   : > { %2191 = vmatmul.msk.bf16.gmra.mxu2 %vm1001_vm0, %v534_v25  ;;  %v378_v25 = vld [vmem:[%s2745_s26 + $0x368] sm:$0xff] }
 0x16a   : > { %v1292_v31 = vpop.f32.mrf.mxu2  ;;  %v1116_v35 = vpop.f32.mrf.mxu0 }
 0x16b   : > { %v3151_v34 = vadd.f32 %v1292_v31, %v1204_v3  ;;  %v1117_v36 = vadd.f32 %v2893_v9, %v1116_v35  ;;  %v1205_v38 = vpop.f32.mrf.mxu1  ;;  %v373_v3 = vld [vmem:[%s2745_s26 + $0x340] sm:$0xff]  ;;  %v380_v31 = vld [vmem:[%s2745_s26 + $0x378] sm:$0xff] }
 0x16c   : > { %v548_v46 = vpack.c.bf16 %v380_v31, %v373_v3 }
 0x16d   : > { %v1206_v5 = vadd.f32 %v1205_v38, %v1117_v36  ;;  %v601_v36 = vpack.c.bf16 %v489_v22, %v482_v21  ;;  %v546_v38 = vpack.c.bf16 %v378_v25, %v371_v24 }
 0x172   : > { %v1294_v18 = vpop.f32.mrf.mxu2  ;;  %v1119_v63 = vpop.f32.mrf.mxu0 }
 0x173   : > { %v3162_v60 = vadd.f32 %v1294_v18, %v1206_v5  ;;  %v1120_v6 = vadd.f32 %v2893_v9, %v1119_v63  ;;  %v1208_v7 = vpop.f32.mrf.mxu1 }
 0x175   : > { %v1209_v8 = vadd.f32 %v1208_v7, %v1120_v6  ;;  %1395 = vmatmul.bf16.gmra.mxu3 %v594_v52  ;;  %1444 = vmatmul.bf16.gmra.mxu0 %v539_v37  ;;  %v387_v6 = vld [vmem:[%s2745_s26 + $0x3b0] sm:$0xff]  ;;  %v394_v7 = vld [vmem:[%s2745_s26 + $0x3e8] sm:$0xff] }
 0x176   : > { %1533 = vmatmul.bf16.gmra.mxu1 %v540_v0  ;;  %v385_v0 = vld [vmem:[%s2745_s26 + $0x3a0] sm:$0xff]  ;;  %v555_v21 = vpack.c.bf16 %v394_v7, %v387_v6 }
 0x177   : > { %2192 = vmatmul.msk.bf16.gmra.mxu2 %vm1001_vm0, %v541_v45  ;;  %v392_v45 = vld [vmem:[%s2745_s26 + $0x3d8] sm:$0xff] }
 0x17a   : > { %v1297_v10 = vpop.f32.mrf.mxu2  ;;  %v1121_v12 = vpop.f32.mrf.mxu0 }
 0x17b   : > { %v3166_v11 = vadd.f32 %v1297_v10, %v1209_v8  ;;  %v1122_v41 = vadd.f32 %v2893_v9, %v1121_v12  ;;  %v1210_v13 = vpop.f32.mrf.mxu1  ;;  %v386_v8 = vld [vmem:[%s2745_s26 + $0x3a8] sm:$0xff]  ;;  %v393_v10 = vld [vmem:[%s2745_s26 + $0x3e0] sm:$0xff] }
 0x17c   : > { %v554_v22 = vpack.c.bf16 %v393_v10, %v386_v8  ;;  %v3207_v10 = vpop.f32.mrf.mxu3 }
 0x17d   : > { %v1211_v16 = vadd.f32 %v1210_v13, %v1122_v41  ;;  %v553_v41 = vpack.c.bf16 %v392_v45, %v385_v0 }
 0x182   : > { %v1299_v35 = vpop.f32.mrf.mxu2  ;;  %v1124_v39 = vpop.f32.mrf.mxu0 }
 0x183   : > { %v3177_v5 = vadd.f32 %v1299_v35, %v1211_v16  ;;  %v1125_v47 = vadd.f32 %v2893_v9, %v1124_v39  ;;  %v1213_v48 = vpop.f32.mrf.mxu1  ;;  %v406_v39 = vld [vmem:[%s2745_s26 + $0x448] sm:$0xff] }
 0x185   : > { %3534 = vst [vmem:[#allocation12_spill] sm:$0xff] %v3177_v5  ;;  %v1214_v49 = vadd.f32 %v1213_v48, %v1125_v47  ;;  %1400 = vmatmul.bf16.gmra.mxu3 %v601_v36  ;;  %1449 = vmatmul.bf16.gmra.mxu0 %v546_v38  ;;  %v399_v38 = vld [vmem:[%s2745_s26 + $0x410] sm:$0xff] }
 0x186   : > { %1538 = vmatmul.bf16.gmra.mxu1 %v547_v43  ;;  %v401_v43 = vld [vmem:[%s2745_s26 + $0x420] sm:$0xff]  ;;  %v407_v47 = vld [vmem:[%s2745_s26 + $0x450] sm:$0xff] }
 0x187   : > { %2193 = vmatmul.msk.bf16.gmra.mxu2 %vm1001_vm0, %v548_v46  ;;  %v408_v46 = vld [vmem:[%s2745_s26 + $0x458] sm:$0xff] }
 0x18a   : > { %v1302_v53 = vpop.f32.mrf.mxu2  ;;  %v1126_v18 = vpop.f32.mrf.mxu0 }
 0x18b   : > { %v3181_v55 = vadd.f32 %v1302_v53, %v1214_v49  ;;  %v1127_v52 = vadd.f32 %v2893_v9, %v1126_v18  ;;  %v1215_v37 = vpop.f32.mrf.mxu1  ;;  %v560_v49 = vpack.c.bf16 %v406_v39, %v399_v38 }
 0x18d   : > { %3535 = vst [vmem:[#allocation13_spill] sm:$0xff] %v3181_v55  ;;  %v1216_v63 = vadd.f32 %v1215_v37, %v1127_v52  ;;  %v562_v52 = vpack.c.bf16 %v408_v46, %v401_v43  ;;  %v3219_v46 = vpop.f32.mrf.mxu3 }
 0x192   : > { %v1304_v12 = vpop.f32.mrf.mxu2  ;;  %v1415_v16 = vpop.f32.mrf.mxu0 }
 0x193   : > { %v3190_v13 = vadd.f32 %v1304_v12, %v1216_v63  ;;  %v1416_v9 = vadd.f32 %v1415_v16, %v3050_v32  ;;  %v1504_v24 = vpop.f32.mrf.mxu1  ;;  %v400_v32 = vld [vmem:[%s2745_s26 + $0x418] sm:$0xff] }
 0x194   : > { %v561_v37 = vpack.c.bf16 %v407_v47, %v400_v32 }
 0x195   : > { %3536 = vst [vmem:[#allocation14_spill] sm:$0xff] %v3190_v13  ;;  %v1505_v25 = vadd.f32 %v1504_v24, %v1416_v9  ;;  %1454 = vmatmul.bf16.gmra.mxu0 %v553_v41  ;;  %v420_v9 = vld [vmem:[%s2745_s26 + $0x4b8] sm:$0xff]  ;;  %v415_v24 = vld [vmem:[%s2745_s26 + $0x490] sm:$0xff] }
 0x196   : > { %1543 = vmatmul.bf16.gmra.mxu1 %v554_v22  ;;  %v413_v22 = vld [vmem:[%s2745_s26 + $0x480] sm:$0xff] }
 0x197   : > { %2194 = vmatmul.msk.bf16.gmra.mxu2 %vm1001_vm0, %v555_v21 }
 0x19a   : > { %v1593_v23 = vpop.f32.mrf.mxu2  ;;  %v1417_v3 = vpop.f32.mrf.mxu0 }
 0x19b   : > { %v1594_v27 = vadd.f32 %v1593_v23, %v1505_v25  ;;  %v1418_v31 = vadd.f32 %v1417_v3, %v3064_v26  ;;  %v1506_v35 = vpop.f32.mrf.mxu1  ;;  %v422_v25 = vld [vmem:[%s2745_s26 + $0x4c8] sm:$0xff] }
 0x19c   : > { %v414_v23 = vld [vmem:[%s2745_s26 + $0x488] sm:$0xff]  ;;  %v569_v38 = vpack.c.bf16 %v422_v25, %v415_v24 }
 0x19d   : > { %v1507_v36 = vadd.f32 %v1506_v35, %v1418_v31  ;;  %2397 = vtanh.f32 %v1594_v27  ;;  %v421_v27 = vld [vmem:[%s2745_s26 + $0x4c0] sm:$0xff]  ;;  %v567_v31 = vpack.c.bf16 %v420_v9, %v413_v22 }
 0x19e   : > { %v568_v39 = vpack.c.bf16 %v421_v27, %v414_v23 }
 0x1a2   : > { %v1595_v48 = vpop.f32.mrf.mxu2  ;;  %v1420_v18 = vpop.f32.mrf.mxu0 }
 0x1a3   : > { %v1596_v53 = vadd.f32 %v1595_v48, %v1507_v36  ;;  %v1421_v63 = vadd.f32 %v1420_v18, %v3071_v2  ;;  %v1509_v0 = vpop.f32.mrf.mxu1  ;;  %v3203_v45 = vpop.eup %2397 }
 0x1a5   : > { %2399 = vtanh.f32 %v1596_v53  ;;  %v1510_v26 = vadd.f32 %v1509_v0, %v1421_v63  ;;  %1459 = vmatmul.bf16.gmra.mxu0 %v560_v49  ;;  %v427_v0 = vld [vmem:[%s2745_s26 + $0x4f0] sm:$0xff] }
 0x1a6   : > { %1548 = vmatmul.bf16.gmra.mxu1 %v561_v37  ;;  %v483_v37 = vld [vmem:[%s2745_s26 + $0x6b0] sm:$0xff] }
 0x1a7   : > { %2195 = vmatmul.msk.bf16.gmra.mxu2 %vm1001_vm0, %v562_v52 }
 0x1aa   : > { %v1598_v6 = vpop.f32.mrf.mxu2  ;;  %v1422_v2 = vpop.f32.mrf.mxu0 }
 0x1ab   : > { %v3205_v7 = vpop.eup %2399  ;;  %v1599_v8 = vadd.f32 %v1598_v6, %v1510_v26  ;;  %v1423_v12 = vadd.f32 %v1422_v2, %v3085_v54  ;;  %v1511_v41 = vpop.f32.mrf.mxu1  ;;  %v434_v26 = vld [vmem:[%s2745_s26 + $0x528] sm:$0xff]  ;;  %v429_v6 = vld [vmem:[%s2745_s26 + $0x500] sm:$0xff]  ;;  %v436_v2 = vld [vmem:[%s2745_s26 + $0x538] sm:$0xff] }
 0x1ac   : > { %v574_v22 = vpack.c.bf16 %v434_v26, %v427_v0  ;;  %v576_v25 = vpack.c.bf16 %v436_v2, %v429_v6  ;;  %v449_v0 = vld [vmem:[%s2745_s26 + $0x5a0] sm:$0xff] }
 0x1ad   : > { %v1512_v21 = vadd.f32 %v1511_v41, %v1423_v12  ;;  %2401 = vtanh.f32 %v1599_v8  ;;  %v3232_v8 = vpop.f32.mrf.mxu3  ;;  %v428_v12 = vld [vmem:[%s2745_s26 + $0x4f8] sm:$0xff]  ;;  %v435_v41 = vld [vmem:[%s2745_s26 + $0x530] sm:$0xff] }
 0x1ae   : > { %v575_v23 = vpack.c.bf16 %v435_v41, %v428_v12 }
 0x1b2   : > { %v1600_v3 = vpop.f32.mrf.mxu2  ;;  %v1425_v36 = vpop.f32.mrf.mxu0 }
 0x1b3   : > { %v1601_v35 = vadd.f32 %v1600_v3, %v1512_v21  ;;  %v1426_v54 = vadd.f32 %v1425_v36, %v3092_v40  ;;  %v1514_v43 = vpop.f32.mrf.mxu1  ;;  %v3222_v47 = vpop.eup %2401 }
 0x1b5   : > { %2403 = vtanh.f32 %v1601_v35  ;;  %v1515_v32 = vadd.f32 %v1514_v43, %v1426_v54  ;;  %1464 = vmatmul.bf16.gmra.mxu0 %v567_v31  ;;  %v3241_v35 = vpop.f32.mrf.mxu3 }
 0x1b6   : > { %1553 = vmatmul.bf16.gmra.mxu1 %v568_v39 }
 0x1b7   : > { %2196 = vmatmul.msk.bf16.gmra.mxu2 %vm1001_vm0, %v569_v38 }
 0x1ba   : > { %v1603_v48 = vpop.f32.mrf.mxu2  ;;  %v1427_v53 = vpop.f32.mrf.mxu0 }
 0x1bb   : > { %v3224_v49 = vpop.eup %2403  ;;  %v1604_v40 = vadd.f32 %v1603_v48, %v1515_v32  ;;  %v1428_v18 = vadd.f32 %v1427_v53, %v3106_v19  ;;  %v1516_v52 = vpop.f32.mrf.mxu1  ;;  %v448_v53 = vld [vmem:[%s2745_s26 + $0x598] sm:$0xff]  ;;  %v490_v32 = vld [vmem:[%s2745_s26 + $0x6e8] sm:$0xff] }
 0x1bc   : > { %v602_v61 = vpack.c.bf16 %v490_v32, %v483_v37 }
 0x1bd   : > { %v1517_v63 = vadd.f32 %v1516_v52, %v1428_v18  ;;  %2405 = vtanh.f32 %v1604_v40  ;;  %v441_v40 = vld [vmem:[%s2745_s26 + $0x560] sm:$0xff]  ;;  %v443_v18 = vld [vmem:[%s2745_s26 + $0x570] sm:$0xff]  ;;  %v450_v52 = vld [vmem:[%s2745_s26 + $0x5a8] sm:$0xff] }
 0x1be   : > { %v581_v6 = vpack.c.bf16 %v448_v53, %v441_v40  ;;  %v583_v41 = vpack.c.bf16 %v450_v52, %v443_v18  ;;  %v462_v40 = vld [vmem:[%s2745_s26 + $0x608] sm:$0xff]  ;;  %v457_v53 = vld [vmem:[%s2745_s26 + $0x5e0] sm:$0xff]  ;;  %v464_v18 = vld [vmem:[%s2745_s26 + $0x618] sm:$0xff] }
 0x1bf   : > { %v456_v52 = vld [vmem:[%s2745_s26 + $0x5d8] sm:$0xff] }
 0x1c2   : > { %v1605_v21 = vpop.f32.mrf.mxu2  ;;  %v1430_v24 = vpop.f32.mrf.mxu0 }
 0x1c3   : > { %v1606_v9 = vadd.f32 %v1605_v21, %v1517_v63  ;;  %v1431_v19 = vadd.f32 %v1430_v24, %v3113_v14  ;;  %v1519_v27 = vpop.f32.mrf.mxu1  ;;  %v3239_v31 = vpop.eup %2405  ;;  %v442_v63 = vld [vmem:[%s2745_s26 + $0x568] sm:$0xff] }
 0x1c4   : > { %v582_v21 = vpack.c.bf16 %v449_v0, %v442_v63  ;;  %v463_v63 = vld [vmem:[%s2745_s26 + $0x610] sm:$0xff] }
 0x1c5   : > { %2407 = vtanh.f32 %v1606_v9  ;;  %v1520_v3 = vadd.f32 %v1519_v27, %v1431_v19  ;;  %1469 = vmatmul.bf16.gmra.mxu0 %v574_v22  ;;  %v3254_v22 = vpop.f32.mrf.mxu3 }
 0x1c6   : > { %1558 = vmatmul.bf16.gmra.mxu1 %v575_v23  ;;  %v1349_v23 = vadd.f32 %v3207_v10, %v3025_v50 }
 0x1c7   : > { %2197 = vmatmul.msk.bf16.gmra.mxu2 %vm1001_vm0, %v576_v25 }
 0x1ca   : > { %v1608_v36 = vpop.f32.mrf.mxu2  ;;  %v1432_v39 = vpop.f32.mrf.mxu0 }
 0x1cb   : > { %v3243_v38 = vpop.eup %2407  ;;  %v1609_v14 = vadd.f32 %v1608_v36, %v1520_v3  ;;  %v1433_v54 = vadd.f32 %v1432_v39, %v3127_v56  ;;  %v1521_v43 = vpop.f32.mrf.mxu1  ;;  %v485_v39 = vld [vmem:[%s2745_s26 + $0x6c0] sm:$0xff] }
 0x1cd   : > { %v1522_v48 = vadd.f32 %v1521_v43, %v1433_v54  ;;  %2409 = vtanh.f32 %v1609_v14  ;;  %v3266_v54 = vpop.f32.mrf.mxu3 }
 0x1d2   : > { %v1610_v26 = vpop.f32.mrf.mxu2  ;;  %v1435_v12 = vpop.f32.mrf.mxu0 }
 0x1d3   : > { %v1611_v2 = vadd.f32 %v1610_v26, %v1522_v48  ;;  %v1436_v56 = vadd.f32 %v1435_v12, %v3134_v58  ;;  %v1524_v9 = vpop.f32.mrf.mxu1  ;;  %v3258_v25 = vpop.eup %2409  ;;  %v455_v48 = vld [vmem:[%s2745_s26 + $0x5d0] sm:$0xff] }
 0x1d4   : > { %v588_v10 = vpack.c.bf16 %v462_v40, %v455_v48  ;;  %v477_v48 = vld [vmem:[%s2745_s26 + $0x680] sm:$0xff] }
 0x1d5   : > { %2411 = vtanh.f32 %v1611_v2  ;;  %v1525_v24 = vadd.f32 %v1524_v9, %v1436_v56  ;;  %1474 = vmatmul.bf16.gmra.mxu0 %v581_v6  ;;  %v590_v6 = vpack.c.bf16 %v464_v18, %v457_v53  ;;  %v589_v2 = vpack.c.bf16 %v463_v63, %v456_v52 }
 0x1d6   : > { %1563 = vmatmul.bf16.gmra.mxu1 %v582_v21 }
 0x1d7   : > { %2198 = vmatmul.msk.bf16.gmra.mxu2 %vm1001_vm0, %v583_v41  ;;  %v1363_v41 = vpop.f32.mrf.mxu3 }
 0x1d8   : > { %v1364_v29 = vadd.f32 %v1363_v41, %v3087_v28 }
 0x1da   : > { %v1613_v19 = vpop.f32.mrf.mxu2  ;;  %v1437_v3 = vpop.f32.mrf.mxu0 }
 0x1db   : > { %v3262_v58 = vpop.eup %2411  ;;  %v1614_v27 = vadd.f32 %v1613_v19, %v1525_v24  ;;  %v1438_v36 = vadd.f32 %v1437_v3, %v1349_v23  ;;  %v1526_v14 = vpop.f32.mrf.mxu1  ;;  %v476_v3 = vld [vmem:[%s2745_s26 + $0x678] sm:$0xff] }
 0x1dc   : > { %v492_v19 = vld [vmem:[%s2745_s26 + $0x6f8] sm:$0xff] }
 0x1dd   : > { %v1527_v43 = vadd.f32 %v1526_v14, %v1438_v36  ;;  %2413 = vtanh.f32 %v1614_v27  ;;  %v469_v27 = vld [vmem:[%s2745_s26 + $0x640] sm:$0xff]  ;;  %v471_v36 = vld [vmem:[%s2745_s26 + $0x650] sm:$0xff]  ;;  %v478_v14 = vld [vmem:[%s2745_s26 + $0x688] sm:$0xff] }
 0x1de   : > { %v595_v18 = vpack.c.bf16 %v476_v3, %v469_v27  ;;  %v597_v63 = vpack.c.bf16 %v478_v14, %v471_v36  ;;  %v491_v27 = vld [vmem:[%s2745_s26 + $0x6f0] sm:$0xff]  ;;  %v604_v36 = vpack.c.bf16 %v492_v19, %v485_v39 }
 0x1df   : > { %v1366_v40 = vpop.f32.mrf.mxu3  ;;  %v603_v14 = vpack.c.bf16 %v491_v27, %v484_v51  ;;  %v1359_v51 = vadd.f32 %v3254_v22, %v3066_v57  ;;  %v1352_v22 = vadd.f32 %v3219_v46, %v3031_v62 }
 0x1e2   : > { %v1615_v50 = vpop.f32.mrf.mxu2  ;;  %v3274_v26 = vpop.f32.mrf.mxu0 }
 0x1e3   : > { %v1616_v0 = vadd.f32 %v1615_v50, %v1527_v43  ;;  %v3276_v12 = vpop.f32.mrf.mxu1  ;;  %v3279_v21 = vpop.eup %2413  ;;  %v470_v43 = vld [vmem:[%s2745_s26 + $0x648] sm:$0xff]  ;;  %s1886_s26 = sshll.u32 %s1883_s11, 4  ;;  %s1887_s26 = int_to_ptr.hbm [resolvable:$true] %s1886_s26 }
 0x1e4   : > { %v596_v50 = vpack.c.bf16 %v477_v48, %v470_v43  ;;  %s2483_s15 = sshra.s32 %s1887_s26, 4  ;;  %s2484_s15 = int_to_ptr.hbm [resolvable:$true] %s2483_s15 }
 0x1e5   : > { %2415 = vtanh.f32 %v1616_v0  ;;  %1479 = vmatmul.bf16.gmra.mxu0 %v588_v10  ;;  %s2485_s16 = scalar_lea.hbm %s2484_s15, 32  ;;  %p2490_p0 = scmp.lt.s32.totalorder %s2484_s15, %s3527_s6 }
 0x1e6   : > { %1568 = vmatmul.bf16.gmra.mxu1 %v589_v2  ;;  %p2486_p11 = scmp.ne.s32.totalorder %s2484_s15, %s2485_s16  ;;  %p2491_p1 = scmp.lt.s32.totalorder %s2489_s20, %s2485_s16 }
 0x1e7   : > { %2199 = vmatmul.msk.bf16.gmra.mxu2 %vm1001_vm0, %v590_v6  ;;  %v1368_v2 = vpop.f32.mrf.mxu3 }
 0x1e8   : > { %p2487_p12 = pnand %p2486_p11, %p2645_p5  ;;  %p2492_p2 = por %p2491_p1, %p2490_p0 }
 0x1ea   : > { %v3281_v56 = vpop.f32.mrf.mxu2  ;;  %v3285_v24 = vpop.f32.mrf.mxu0  ;;  %p2488_p13 = pneg %p2487_p12 }
 0x1eb   : > { %v3283_v9 = vpop.eup %2415  ;;  %v3287_v23 = vpop.f32.mrf.mxu1 }
 0x1ec   : > { %p2493_p3 = pnand %p2492_p2, %p2488_p13 }
 0x1ef   : > { %v1371_v48 = vpop.f32.mrf.mxu3 }
 0x1f2   : > { %v3297_v53 = vpop.f32.mrf.mxu2  ;;  %v1445_v52 = vpop.f32.mrf.mxu0 }
 0x1f3   : > { %v1534_v10 = vpop.f32.mrf.mxu1 }
 0x1f5   : > { %1484 = vmatmul.bf16.gmra.mxu0 %v595_v18  ;;  %v1362_v18 = vadd.f32 %v3266_v54, %v3073_v4  ;;  %v1367_v54 = vadd.f32 %v1366_v40, %v3094_v42 }
 0x1f6   : > { %1573 = vmatmul.bf16.gmra.mxu1 %v596_v50 }
 0x1f7   : > { %2200 = vmatmul.msk.bf16.gmra.mxu2 %vm1001_vm0, %v597_v63  ;;  %v3314_v32 = vpop.f32.mrf.mxu3 }
 0x1fa   : > { %v1623_v0 = vpop.f32.mrf.mxu2  ;;  %v1447_v6 = vpop.f32.mrf.mxu0 }
 0x1fb   : > { %v1536_v16 = vpop.f32.mrf.mxu1  ;;  %v1448_v19 = vadd.f32 %v1447_v6, %v1359_v51  ;;  %v1441_v6 = vadd.f32 %v3274_v26, %v1352_v22 }
 0x1ff   : > { %v1376_v40 = vpop.f32.mrf.mxu3 }
 0x202   : > { %v1625_v3 = vpop.f32.mrf.mxu2  ;;  %v1450_v17 = vpop.f32.mrf.mxu0 }
 0x203   : > { %v1539_v43 = vpop.f32.mrf.mxu1  ;;  %v1451_v63 = vadd.f32 %v1450_v17, %v1362_v18 }
 0x205   : > { %1489 = vmatmul.bf16.gmra.mxu0 %v602_v61  ;;  %v1540_v37 = vadd.f32 %v1539_v43, %v1451_v63  ;;  %v1357_v61 = vadd.f32 %v3241_v35, %v3052_v33  ;;  %v1354_v33 = vadd.f32 %v3232_v8, %v3045_v20 }
 0x206   : > { %1578 = vmatmul.bf16.gmra.mxu1 %v603_v14 }
 0x207   : > { %2201 = vmatmul.msk.bf16.gmra.mxu2 %vm1001_vm0, %v604_v36  ;;  %v1446_v4 = vadd.f32 %v1445_v52, %v1357_v61  ;;  %v1378_v61 = vpop.f32.mrf.mxu3 }
 0x209   : > { %v1535_v57 = vadd.f32 %v1534_v10, %v1446_v4  ;;  %v1369_v10 = vadd.f32 %v1368_v2, %v3108_v1 }
 0x20a   : > { %v1628_v50 = vpop.f32.mrf.mxu2  ;;  %v1452_v13 = vpop.f32.mrf.mxu0 }
 0x20b   : > { %v1541_v55 = vpop.f32.mrf.mxu1  ;;  %v1453_v5 = vadd.f32 %v1452_v13, %v1364_v29  ;;  %v1629_v39 = vadd.f32 %v1628_v50, %v1540_v37  ;;  %v1537_v13 = vadd.f32 %v1536_v16, %v1448_v19  ;;  %v1372_v37 = vadd.f32 %v1371_v48, %v3115_v15 }
 0x20d   : > { %v1542_v27 = vadd.f32 %v1541_v55, %v1453_v5  ;;  %2417 = vtanh.f32 %v1629_v39  ;;  %v1626_v35 = vadd.f32 %v1625_v3, %v1537_v13  ;;  %v1624_v5 = vadd.f32 %v1623_v0, %v1535_v57 }
 0x20e   : > { %v1443_v55 = vadd.f32 %v3285_v24, %v1354_v33  ;;  %v1530_v0 = vadd.f32 %v3276_v12, %v1441_v6 }
 0x20f   : > { %v1381_v33 = vpop.f32.mrf.mxu3 }
 0x210   : > { %v1532_v46 = vadd.f32 %v3287_v23, %v1443_v55  ;;  %v1619_v43 = vadd.f32 %v3281_v56, %v1530_v0 }
 0x212   : > { %v1630_v17 = vpop.f32.mrf.mxu2  ;;  %v1455_v41 = vpop.f32.mrf.mxu0  ;;  %v1621_v26 = vadd.f32 %v3297_v53, %v1532_v46 }
 0x213   : > { %v1631_v28 = vadd.f32 %v1630_v17, %v1542_v27  ;;  %v1544_v29 = vpop.f32.mrf.mxu1  ;;  %v1456_v36 = vadd.f32 %v1455_v41, %v1367_v54  ;;  %v3322_v42 = vpop.eup %2417  ;;  %v1374_v17 = vadd.f32 %v3314_v32, %v3129_v44  ;;  %v1377_v32 = vadd.f32 %v1376_v40, %v3136_v59 }
 0x214   : > { %v1379_v59 = vadd.f32 %v1378_v61, %v3147_v30 }
 0x215   : > { %2419 = vtanh.f32 %v1631_v28  ;;  %v1545_v52 = vadd.f32 %v1544_v29, %v1456_v36 }
 0x216   : > { %2421 = vtanh.f32 %v1626_v35 }
 0x217   : > { %2423 = vtanh.f32 %v1624_v5 }
 0x21a   : > { %v1633_v16 = vpop.f32.mrf.mxu2  ;;  %v1457_v8 = vpop.f32.mrf.mxu0 }
 0x21b   : > { %v3325_v14 = vpop.eup %2419  ;;  %v1634_v20 = vadd.f32 %v1633_v16, %v1545_v52  ;;  %v1546_v3 = vpop.f32.mrf.mxu1  ;;  %v1458_v24 = vadd.f32 %v1457_v8, %v1369_v10  ;;  %v3537_v10 = vpack.c.bf16 %v3283_v9, %v3279_v21 }
 0x21c   : > { %v1786_v62 = vpack.c.bf16 %v3325_v14, %v3322_v42  ;;  %v3334_v1 = vpop.eup %2421 }
 0x21d   : > { %2425 = vtanh.f32 %v1634_v20  ;;  %v1547_v2 = vadd.f32 %v1546_v3, %v1458_v24  ;;  %v3336_v18 = vpop.eup %2423  ;;  %v1383_v20 = vpop.f32.mrf.mxu3 }
 0x21e   : > { %1813 = vmatpush.bf16.xpose.msra.mxu3 %v1786_v62  ;;  %2427 = vtanh.f32 %v1621_v26  ;;  %v1785_v53 = vpack.c.bf16 %v3334_v1, %v3336_v18 }
 0x21f   : > { %2429 = vtanh.f32 %v1619_v43 }
 0x222   : > { %v1635_v63 = vpop.f32.mrf.mxu2  ;;  %v1460_v51 = vpop.f32.mrf.mxu0 }
 0x223   : > { %v3338_v50 = vpop.eup %2425  ;;  %v1636_v23 = vadd.f32 %v1635_v63, %v1547_v2  ;;  %v1549_v12 = vpop.f32.mrf.mxu1  ;;  %v1461_v39 = vadd.f32 %v1460_v51, %v1372_v37  ;;  %v3538_v2 = vpack.c.bf16 %v3262_v58, %v3258_v25  ;;  %v1382_v51 = vadd.f32 %v1381_v33, %v3151_v34 }
 0x224   : > { %v2343_v56 = vpack.i.bf16 %v3338_v50, %v3203_v45  ;;  %v3345_v19 = vpop.eup %2427 }
 0x225   : > { %2431 = vtanh.f32 %v1636_v23  ;;  %v1550_v27 = vadd.f32 %v1549_v12, %v1461_v39  ;;  %v3347_v15 = vpop.eup %2429  ;;  %v1386_v37 = vpop.f32.mrf.mxu3 }
 0x226   : > { %1814 = vmatpush.bf16.xpose.msra.mxu3 %v1785_v53  ;;  %2344 = vxpose.xlu0.b32.start [1/16] (narrow) %v2343_v56, 32  ;;  %v1784_v29 = vpack.c.bf16 %v3345_v19, %v3347_v15 }
 0x22a   : > { %v1638_v48 = vpop.f32.mrf.mxu2  ;;  %v1462_v28 = vpop.f32.mrf.mxu0 }
 0x22b   : > { %v3349_v4 = vpop.eup %2431  ;;  %v1639_v54 = vadd.f32 %v1638_v48, %v1550_v27  ;;  %v1551_v41 = vpop.f32.mrf.mxu1  ;;  %v1463_v57 = vadd.f32 %v1462_v28, %v1374_v17  ;;  %v3539_v27 = vpack.c.bf16 %v3243_v38, %v3239_v31  ;;  %v1384_v28 = vadd.f32 %v1383_v20, %v3162_v60 }
 0x22c   : > { %v2345_v13 = vpack.i.bf16 %v3349_v4, %v3205_v7  ;;  %v1787_v36 = vpack.c.bf16 %v3349_v4, %v3338_v50 }
 0x22d   : > { %2433 = vtanh.f32 %v1639_v54  ;;  %v1552_v35 = vadd.f32 %v1551_v41, %v1463_v57 }
 0x22e   : > { %1815 = vmatpush.bf16.xpose.msra.mxu3 %v1784_v29  ;;  %2346 = vxpose.xlu0.b32.cont [2/16] (narrow) %v2345_v13, 32  ;;  %v1388_v29 = vpop.f32.mrf.mxu3 }
 0x232   : > { %v1640_v22 = vpop.f32.mrf.mxu2  ;;  %v1465_v55 = vpop.f32.mrf.mxu0 }
 0x233   : > { %v3359_v44 = vpop.eup %2433  ;;  %v1641_v5 = vadd.f32 %v1640_v22, %v1552_v35  ;;  %v1554_v52 = vpop.f32.mrf.mxu1  ;;  %v1466_v16 = vadd.f32 %v1465_v55, %v1377_v32  ;;  %v3540_v35 = vpack.c.bf16 %v3224_v49, %v3222_v47 }
 0x234   : > { %v2347_v6 = vpack.i.bf16 %v3359_v44, %v3222_v47  ;;  %v3541_v47 = vpack.c.bf16 %v3205_v7, %v3203_v45 }
 0x235   : > { %2435 = vtanh.f32 %v1641_v5  ;;  %v1555_v8 = vadd.f32 %v1554_v52, %v1466_v16  ;;  %v1387_v5 = vadd.f32 %v1386_v37, %v3166_v11 }
 0x236   : > { %1816 = vmatpush.bf16.xpose.msra.mxu3 %v3537_v10  ;;  %2348 = vxpose.xlu0.b32.cont [3/16] (narrow) %v2347_v6, 32  ;;  %v1391_v10 = vpop.f32.mrf.mxu3 }
 0x23a   : > { %v1643_v3 = vpop.f32.mrf.mxu2  ;;  %v1467_v46 = vpop.f32.mrf.mxu0 }
 0x23b   : > { %v3367_v62 = vpop.eup %2435  ;;  %v1644_v40 = vadd.f32 %v1643_v3, %v1555_v8  ;;  %v1556_v24 = vpop.f32.mrf.mxu1  ;;  %v1468_v43 = vadd.f32 %v1467_v46, %v1379_v59  ;;  %v3542_v3 = vld [vmem:[#allocation12_spill] sm:$0xff] }
 0x23c   : > { %v2349_v0 = vpack.i.bf16 %v3367_v62, %v3224_v49  ;;  %v1788_v26 = vpack.c.bf16 %v3367_v62, %v3359_v44  ;;  %v1389_v11 = vadd.f32 %v1388_v29, %v3542_v3 }
 0x23d   : > { %2437 = vtanh.f32 %v1644_v40  ;;  %v1557_v63 = vadd.f32 %v1556_v24, %v1468_v43 }
 0x23e   : > { %1817 = vmatpush.bf16.xpose.msra.mxu3 %v3538_v2  ;;  %2350 = vxpose.xlu0.b32.cont [4/16] (narrow) %v2349_v0, 32  ;;  %v1393_v45 = vpop.f32.mrf.mxu3 }
 0x242   : > { %v1645_v23 = vpop.f32.mrf.mxu2  ;;  %v1470_v12 = vpop.f32.mrf.mxu0 }
 0x243   : > { %v3377_v30 = vpop.eup %2437  ;;  %v1646_v61 = vadd.f32 %v1645_v23, %v1557_v63  ;;  %v1559_v53 = vpop.f32.mrf.mxu1  ;;  %v1471_v39 = vadd.f32 %v1470_v12, %v1382_v51  ;;  %v3543_v63 = vld [vmem:[#allocation13_spill] sm:$0xff] }
 0x244   : > { %v2351_v56 = vpack.i.bf16 %v3377_v30, %v3239_v31  ;;  %v1392_v37 = vadd.f32 %v1391_v10, %v3543_v63 }
 0x245   : > { %2439 = vtanh.f32 %v1646_v61  ;;  %v1560_v48 = vadd.f32 %v1559_v53, %v1471_v39 }
 0x246   : > { %1818 = vmatpush.bf16.xpose.msra.mxu3 %v3539_v27  ;;  %2352 = vxpose.xlu0.b32.cont [5/16] (narrow) %v2351_v56, 32  ;;  %v1396_v56 = vpop.f32.mrf.mxu3 }
 0x24a   : > { %v1648_v17 = vpop.f32.mrf.mxu2  ;;  %v1472_v41 = vpop.f32.mrf.mxu0 }
 0x24b   : > { %v3385_v54 = vpop.eup %2439  ;;  %v1649_v34 = vadd.f32 %v1648_v17, %v1560_v48  ;;  %v1561_v13 = vpop.f32.mrf.mxu1  ;;  %v1473_v31 = vadd.f32 %v1472_v41, %v1384_v28  ;;  %v3544_v48 = vld [vmem:[#allocation14_spill] sm:$0xff] }
 0x24c   : > { %v2353_v57 = vpack.i.bf16 %v3385_v54, %v3243_v38  ;;  %v1789_v33 = vpack.c.bf16 %v3385_v54, %v3377_v30  ;;  %v1394_v17 = vadd.f32 %v1393_v45, %v3544_v48 }
 0x24d   : > { %2441 = vtanh.f32 %v1649_v34  ;;  %v1562_v22 = vadd.f32 %v1561_v13, %v1473_v31 }
 0x24e   : > { %1819 = vmatpush.bf16.xpose.msra.mxu3 %v3540_v35  ;;  %2354 = vxpose.xlu0.b32.cont [6/16] (narrow) %v2353_v57, 32 }
 0x252   : > { %v1650_v32 = vpop.f32.mrf.mxu2  ;;  %v1475_v52 = vpop.f32.mrf.mxu0 }
 0x253   : > { %v3395_v60 = vpop.eup %2441  ;;  %v1651_v55 = vadd.f32 %v1650_v32, %v1562_v22  ;;  %v1564_v6 = vpop.f32.mrf.mxu1  ;;  %v1476_v16 = vadd.f32 %v1475_v52, %v1387_v5  ;;  %v3545_v22 = vld [vmem:[#allocation8_spill] sm:$0xff] }
 0x254   : > { %v2355_v38 = vpack.i.bf16 %v3395_v60, %v3258_v25  ;;  %v1397_v32 = vadd.f32 %v1396_v56, %v3545_v22  ;;  %v1398_v52 = vpop.f32.mrf.mxu3 }
 0x255   : > { %2443 = vtanh.f32 %v1651_v55  ;;  %v1565_v49 = vadd.f32 %v1564_v6, %v1476_v16 }
 0x256   : > { %2356 = vxpose.xlu0.b32.cont [7/16] (narrow) %v2355_v38, 32  ;;  %1820 = vmatpush.bf16.xpose.msra.mxu3 %v3541_v47 }
 0x25a   : > { %v1653_v20 = vpop.f32.mrf.mxu2  ;;  %v1477_v40 = vpop.f32.mrf.mxu0 }
 0x25b   : > { %v3403_v8 = vpop.eup %2443  ;;  %v1654_v59 = vadd.f32 %v1653_v20, %v1565_v49  ;;  %v1566_v46 = vpop.f32.mrf.mxu1  ;;  %v1478_v0 = vadd.f32 %v1477_v40, %v1389_v11  ;;  %v3546_v49 = vld [vmem:[#allocation9_spill] sm:$0xff] }
 0x25c   : > { %v2357_v25 = vpack.i.bf16 %v3403_v8, %v3262_v58  ;;  %v1790_v24 = vpack.c.bf16 %v3403_v8, %v3395_v60  ;;  %v1399_v20 = vadd.f32 %v1398_v52, %v3546_v49  ;;  %v2565_v52 = vmov 0  }
 0x25d   : > { %2445 = vtanh.f32 %v1654_v59  ;;  %v1567_v7 = vadd.f32 %v1566_v46, %v1478_v0  ;;  %v1401_v0 = vpop.f32.mrf.mxu3  ;;  %2342 = vset.pattern.permute.xlu1 %v2565_v52 }
 0x25e   : > { %2358 = vxpose.xlu0.b32.cont [8/16] (narrow) %v2357_v25, 32 }
 0x262   : > { %v1655_v43 = vpop.f32.mrf.mxu2  ;;  %v1480_v51 = vpop.f32.mrf.mxu0 }
 0x263   : > { %v3410_v2 = vpop.eup %2445  ;;  %v1656_v23 = vadd.f32 %v1655_v43, %v1567_v7  ;;  %v1569_v61 = vpop.f32.mrf.mxu1  ;;  %v1481_v58 = vadd.f32 %v1480_v51, %v1392_v37  ;;  %v3547_v43 = vld [vmem:[#allocation10_spill] sm:$0xff] }
 0x264   : > { %v2359_v12 = vpack.i.bf16 %v3410_v2, %v3279_v21  ;;  %v1402_v63 = vadd.f32 %v1401_v0, %v3547_v43 }
 0x265   : > { %2447 = vtanh.f32 %v1656_v23  ;;  %v1570_v53 = vadd.f32 %v1569_v61, %v1481_v58  ;;  %v1403_v58 = vpop.f32.mrf.mxu3 }
 0x266   : > { %2360 = vxpose.xlu0.b32.cont [9/16] (narrow) %v2359_v12, 32 }
 0x26a   : > { %v1658_v39 = vpop.f32.mrf.mxu2  ;;  %v1482_v34 = vpop.f32.mrf.mxu0 }
 0x26b   : > { %v3415_v27 = vpop.eup %2447  ;;  %v1659_v28 = vadd.f32 %v1658_v39, %v1570_v53  ;;  %v1571_v41 = vpop.f32.mrf.mxu1  ;;  %v1483_v21 = vadd.f32 %v1482_v34, %v1394_v17  ;;  %v3548_v39 = vld [vmem:[#allocation11_spill] sm:$0xff] }
 0x26c   : > { %v2361_v29 = vpack.i.bf16 %v3415_v27, %v3283_v9  ;;  %v1791_v13 = vpack.c.bf16 %v3415_v27, %v3410_v2  ;;  %v1404_v48 = vadd.f32 %v1403_v58, %v3548_v39 }
 0x26d   : > { %2449 = vtanh.f32 %v1659_v28  ;;  %v1572_v57 = vadd.f32 %v1571_v41, %v1483_v21 }
 0x26e   : > { %2362 = vxpose.xlu0.b32.cont [10/16] (narrow) %v2361_v29, 32 }
 0x272   : > { %v1660_v31 = vpop.f32.mrf.mxu2  ;;  %v1485_v55 = vpop.f32.mrf.mxu0 }
 0x273   : > { %v2450_v35 = vpop.eup %2449  ;;  %v1661_v5 = vadd.f32 %v1660_v31, %v1572_v57  ;;  %v1574_v6 = vpop.f32.mrf.mxu1  ;;  %v1486_v16 = vadd.f32 %v1485_v55, %v1397_v32 }
 0x274   : > { %v2363_v38 = vpack.i.bf16 %v2450_v35, %v3347_v15 }
 0x275   : > { %2451 = vtanh.f32 %v1661_v5  ;;  %v1575_v9 = vadd.f32 %v1574_v6, %v1486_v16 }
 0x276   : > { %2364 = vxpose.xlu0.b32.cont [11/16] (narrow) %v2363_v38, 32 }
 0x27a   : > { %v1663_v10 = vpop.f32.mrf.mxu2  ;;  %v1487_v11 = vpop.f32.mrf.mxu0 }
 0x27b   : > { %v2452_v47 = vpop.eup %2451  ;;  %v1664_v3 = vadd.f32 %v1663_v10, %v1575_v9  ;;  %v1576_v59 = vpop.f32.mrf.mxu1  ;;  %v1488_v25 = vadd.f32 %v1487_v11, %v1399_v20 }
 0x27c   : > { %v2365_v40 = vpack.i.bf16 %v2452_v47, %v3345_v19  ;;  %v1792_v46 = vpack.c.bf16 %v2452_v47, %v2450_v35 }
 0x27d   : > { %2453 = vtanh.f32 %v1664_v3  ;;  %v1577_v45 = vadd.f32 %v1576_v59, %v1488_v25 }
 0x27e   : > { %2366 = vxpose.xlu0.b32.cont [12/16] (narrow) %v2365_v40, 32 }
 0x282   : > { %v1665_v15 = vpop.f32.mrf.mxu2  ;;  %v1490_v23 = vpop.f32.mrf.mxu0 }
 0x283   : > { %v2454_v7 = vpop.eup %2453  ;;  %v1666_v37 = vadd.f32 %v1665_v15, %v1577_v45  ;;  %v1491_v61 = vadd.f32 %v1490_v23, %v1402_v63  ;;  %v1579_v12 = vpop.f32.mrf.mxu1 }
 0x284   : > { %v2367_v51 = vpack.i.bf16 %v2454_v7, %v3336_v18 }
 0x285   : > { %2455 = vtanh.f32 %v1666_v37  ;;  %v1580_v19 = vadd.f32 %v1579_v12, %v1491_v61 }
 0x286   : > { %2368 = vxpose.xlu0.b32.cont [13/16] (narrow) %v2367_v51, 32 }
 0x28a   : > { %v1668_v53 = vpop.f32.mrf.mxu2  ;;  %v1492_v28 = vpop.f32.mrf.mxu0 }
 0x28b   : > { %v2456_v56 = vpop.eup %2455  ;;  %v1669_v17 = vadd.f32 %v1668_v53, %v1580_v19  ;;  %v1493_v29 = vadd.f32 %v1492_v28, %v1404_v48  ;;  %v1581_v21 = vpop.f32.mrf.mxu1 }
 0x28c   : > { %v2369_v34 = vpack.i.bf16 %v2456_v56, %v3334_v1  ;;  %v1793_v41 = vpack.c.bf16 %v2456_v56, %v2454_v7  ;;  %v2263_v1 = vld [vmem:[%s3524_s3] sm:$0xff] }
 0x28d   : > { %2457 = vtanh.f32 %v1669_v17  ;;  %v1582_v18 = vadd.f32 %v1581_v21, %v1493_v29  ;;  %1821 = vmatmul.bf16.vlgmr.msra.gmra.mxu3 %v2263_v1 }
 0x28e   : > { %2370 = vxpose.xlu0.b32.cont [14/16] (narrow) %v2369_v34, 32 }
 0x292   : > { %v1670_v57 = vpop.f32.mrf.mxu2 }
 0x293   : > { %v2458_v31 = vpop.eup %2457  ;;  %v1671_v35 = vadd.f32 %v1670_v57, %v1582_v18 }
 0x294   : > { %v2371_v22 = vpack.i.bf16 %v2458_v31, %v3322_v42  ;;  %v1795_v42 = vld [vmem:[%s3525_s4] sm:$0xff] }
 0x295   : > { %2459 = vtanh.f32 %v1671_v35  ;;  %1799 = vperm.xlu1 %2342, %v1795_v42  }
 0x296   : > { %2372 = vxpose.xlu0.b32.cont [15/16] (narrow) %v2371_v22, 32 }
 0x29b   : > { %v2460_v32 = vpop.eup %2459 }
 0x29c   : > { %v2373_v5 = vpack.i.bf16 %v2460_v32, %v3325_v14  ;;  %v1794_v55 = vpack.c.bf16 %v2460_v32, %v2458_v31  ;;  %v1796_v14 = vld [vmem:[%s3525_s4 + $0x8] sm:$0xff] }
 0x29d   : > { %1804 = vperm.xlu1 %2342, %v1796_v14  }
 0x29e   : > { %2374 = vxpose.xlu0.b32.end [16/16] (narrow) %v2373_v5, 32  ;;  %1827 = vmatpush.bf16.xpose.msrb.mxu3 %v1794_v55 }
 0x2a6   : > { %1828 = vmatpush.bf16.xpose.msrb.mxu3 %v1793_v41 }
 0x2ae   : > { %1829 = vmatpush.bf16.xpose.msrb.mxu3 %v1792_v46 }
 0x2b6   : > { %1830 = vmatpush.bf16.xpose.msrb.mxu3 %v1791_v13 }
 0x2be   : > { %1831 = vmatpush.bf16.xpose.msrb.mxu3 %v1790_v24 }
 0x2c6   : > { %1832 = vmatpush.bf16.xpose.msrb.mxu3 %v1789_v33 }
 0x2ca   : > { %v2375_v60 = vpop.trf.xlu0 }
 0x2cb   : > { %v2379_v8 = vunpack.i.h.bf16 %v2375_v60  ;;  %v2376_v24 = vunpack.i.l.bf16 %v2375_v60 }
 0x2cd   : > { %v1769_v2 = vpack.c.bf16 %v2379_v8, %v2376_v24 }
 0x2ce   : > { %1833 = vmatpush.bf16.xpose.msrb.mxu3 %v1788_v26 }
 0x2cf   : > { %1773 = vst [vmem:[%s3460_s12] sm:$0xff] %v1769_v2 }
 0x2d2   : > { %v2380_v33 = vpop.trf.xlu0 }
 0x2d3   : > { %v2384_v27 = vunpack.i.h.bf16 %v2380_v33  ;;  %v2381_v13 = vunpack.i.l.bf16 %v2380_v33 }
 0x2d5   : > { %v1770_v6 = vpack.c.bf16 %v2384_v27, %v2381_v13 }
 0x2d6   : > { %1834 = vmatpush.bf16.xpose.msrb.mxu3 %v1787_v36 }
 0x2d7   : > { %1774 = vst [vmem:[%s3460_s12 + $0x8] sm:$0xff] %v1770_v6 }
 0x2da   : > { %v2385_v38 = vpop.trf.xlu0 }
 0x2db   : > { %v2389_v16 = vunpack.i.h.bf16 %v2385_v38  ;;  %v2386_v9 = vunpack.i.l.bf16 %v2385_v38 }
 0x2dd   : > { %1835 = vmatmul.bf16.vlgmr.msrb.gmra.mxu3 %v2263_v1  ;;  %v1771_v10 = vpack.c.bf16 %v2389_v16, %v2386_v9 }
 0x2df   : > { %1775 = vst [vmem:[%s3460_s12 + $0x10] sm:$0xff] %v1771_v10 }
 0x2e2   : > { %v2390_v47 = vpop.trf.xlu0 }
 0x2e3   : > { %v2394_v49 = vunpack.i.h.bf16 %v2390_v47  ;;  %v2391_v20 = vunpack.i.l.bf16 %v2390_v47 }
 0x2e5   : > { %v1772_v3 = vpack.c.bf16 %v2394_v49, %v2391_v20 }
 0x2e7   : > { %1776 = vst [vmem:[%s3460_s12 + $0x18] sm:$0xff] %v1772_v3 }
 0x305   : > { %2395 = vset.pattern.permute.xlu0 %v2565_v52 }
 0x307   : > { %v1800_v44 = vpop.permute.xlu1 %1799 }
 0x30f   : > { %v1805_v50 = vpop.permute.xlu1 %1804 }
 0x310   : > { %v1822_v62 = vpop.f32.mrf.mxu3 }
 0x311   : > { %v1823_v26 = vadd.f32 %v1822_v62, %v1800_v44 }
 0x313   : > { %2461 = vtanh.f32 %v1823_v26 }
 0x318   : > { %v1824_v4 = vpop.f32.mrf.mxu3 }
 0x319   : > { %v2462_v36 = vpop.eup %2461  ;;  %v1825_v30 = vadd.f32 %v1824_v4, %v1805_v50 }
 0x31a   : > { %1845 = vst [vmem:[%s3463_s28] sm:$0xff] %v2462_v36 }
 0x31b   : > { %2463 = vtanh.f32 %v1825_v30 }
 0x321   : > { %v2464_v54 = vpop.eup %2463 }
 0x322   : > { %1847 = vst [vmem:[%s3463_s28 + $0x10] sm:$0xff] %v2464_v54 }
 0x323   : > { %2496 = shalt.err (!%p2493_p3)
}
 0x324   : > { %s2566_s12 = smov 128   ;;  %s2567_s10 = smov 512  }
 0x325   : > { %s2568_s11 = smov 8   ;;  %s2264_s17 = sshll.u32 %s2628_s25, 4 }
 0x326   : > { %2292 = dma.vmem_to_hbm [thread:$0]  (%p2645_p5), %s1885_s13, 512, %s1887_s26, %s1855_s14, %s2566_s12, %s2567_s10, %s2568_s11  }
 0x327   : > { %s1866_s18 = scalar_lea.hbm %s3526_s5, %s2264_s17  ;;  %s1867_s20 = sshll.u32 %s3463_s28, 4  ;;  %s1868_s20 = int_to_ptr.vmem [resolvable:$true] %s1867_s20 }
 0x328   : > { %s1869_s29 = sshll.u32 %s1866_s18, 4  ;;  %s1850_s13 = scalar_lea.sflag [#allocation3], %s3457_s19  ;;  %s1870_s29 = int_to_ptr.hbm [resolvable:$true] %s1869_s29 }
 0x329   : > { %s2511_s26 = sshra.s32 %s1870_s29, 4  ;;  %s2517_s12 = scalar_lea.hbm %s3526_s5, 128  ;;  %s2512_s26 = int_to_ptr.hbm [resolvable:$true] %s2511_s26 }
 0x32a   : > { %s2513_s25 = scalar_lea.hbm %s2512_s26, 32  ;;  %p2518_p9 = scmp.lt.s32.totalorder %s2512_s26, %s3526_s5 }
 0x32b   : > { %p2514_p4 = scmp.ne.s32.totalorder %s2512_s26, %s2513_s25  ;;  %p2519_p10 = scmp.lt.s32.totalorder %s2517_s12, %s2513_s25 }
 0x32d   : > { %p2515_p7 = pnand %p2514_p4, %p2645_p5  ;;  %p2520_p11 = por %p2519_p10, %p2518_p9 }
 0x32f   : > { %p2516_p8 = pneg %p2515_p7 }
 0x331   : > { %p2521_p12 = pnand %p2520_p11, %p2516_p8 }
 0x360   : > { %v1836_v11 = vpop.f32.mrf.mxu3 }
 0x361   : > { %v1837_v59 = vadd.f32 %v1836_v11, %v1800_v44 }
 0x363   : > { %2465 = vtanh.f32 %v1837_v59 }
 0x368   : > { %v1838_v40 = vpop.f32.mrf.mxu3 }
 0x369   : > { %v2466_v46 = vpop.eup %2465  ;;  %v1839_v25 = vadd.f32 %v1838_v40, %v1805_v50 }
 0x36a   : > { %1846 = vst [vmem:[%s3463_s28 + $0x8] sm:$0xff] %v2466_v46 }
 0x36b   : > { %2467 = vtanh.f32 %v1839_v25 }
 0x371   : > { %v2468_v0 = vpop.eup %2467 }
 0x372   : > { %1848 = vst [vmem:[%s3463_s28 + $0x18] sm:$0xff] %v2468_v0 }
 0x373   : > { %2524 = shalt.err (!%p2521_p12)
}
 0x374   : > { %s2569_s19 = smov 256   ;;  %s2570_s28 = smov 1024  }
 0x375   : > { %s2571_s17 = smov 16  }
 0x376   : > { %2291 = dma.vmem_to_hbm [thread:$0]  (%p2645_p5), %s1868_s20, 512, %s1870_s29, %s1850_s13, %s2569_s19, %s2570_s28, %s2571_s17  }
 0x377 PF: > { %p2302_p13 = scmp.ge.s32.totalorder %s2563_s24, 2  ;;  %s1901_s15 = sand.u32 1, %s2551_s21  }
 0x378   : > { %s1902_s16 = scalar_lea.sflag [#allocation3], %s1901_s15 }
 0x379   : > { %p2296_p0 = pnand %p2302_p13, %p2649_p6 }
 0x37b   : > { %p2297_p1 = pneg %p2296_p0 }
 0x37d   : > { %2542 = dma.done.wait (%p2297_p1), %s1902_s16, 512  }
 0x37e   : > { %2544 = vsyncadd (%p2297_p1), %s1902_s16, 4294966784  ;;  %s1912_s18 = scalar_lea.sflag [#allocation5], %s1901_s15 }
 0x37f   : > { %2546 = dma.done.wait (%p2297_p1), %s1912_s18, 512  }
 0x380   : > { %2548 = vsyncadd (%p2297_p1), %s1912_s18, 4294966784  ;;  %p20_p5 = scmp.ge.s32.totalorder %s2632_s27, 6   ;;  %s3549_s21 = smov %s2555_s22 }
 0x381   : > { %s3550_s22 = smov %s2559_s23  ;;  %s3551_s23 = smov %s2643_s30 }
 0x382   : > { %s3552_s24 = smov %s2632_s27  ;;  %22 = sbr.rel (!%p20_p5) target bundleno = 5 (0x5), region = 92 }
 0x387   :  { %1918 = vsyncpa [#allocation3], 1 }
 0x388   :  { %1920 = vsyncpa [#allocation3 + $0x1], 1 }
 0x389   :  { %1921 = vsyncpa [#allocation5], 1 }
 0x38a   :  { %1923 = vsyncpa [#allocation5 + $0x1], 1 }

</bundles_post_ra>
